<compile_context>
chip_gen: v6e
topology: v6e:2x2x1
jax: 0.10.0
libtpu: 0.0.40
codegen_flags: <defaults>
</compile_context>

<pallas_src>
import functools
import math

import jax
import jax.numpy as jnp
from jax import lax
from jax.experimental import pallas as pl
from jax.experimental.pallas import tpu as pltpu


def _round_up(x, m):
    return (x + m - 1) // m * m


@functools.lru_cache(maxsize=1)
def _vmem_limit_bytes():
    # v5e/v6e: 128 MiB VMEM per TensorCore, v7x: 64 MiB.  Leave headroom for
    # double buffering + internal scratch.
    try:
        cap = pltpu.get_tpu_info().vmem_capacity_bytes
        return int(cap * 3 // 4)
    except Exception:
        return 48 * 1024 * 1024


# --------------------------------------------------------------------------
# Fused (GroupNorm + SiLU) -> Conv2d (-> + residual) Pallas kernel.
# Grid = (batch, Cout tiles).  The normalized, SiLU'd, zero-padded input is
# staged once per batch into a VMEM scratch (at j == 0); each Cout tile then
# runs kh*kw bf16 MXU matmuls over the flat (H*Wpad, Cin) layout, realigning
# the taps with XLU rolls of the fp32 product.
# --------------------------------------------------------------------------
def _make_conv_kernel(*, H, W, KH, KW, Cin, Ct, Wpad, has_gn, silu, has_res,
                      G, eps):
    ph, pw = KH // 2, KW // 2
    Hp = H + KH - 1
    HWp = H * Wpad

    def kernel(*refs):
        x_ref, w_ref, b_ref = refs[0], refs[1], refs[2]
        i = 3
        if has_gn:
            g_ref, be_ref, m_ref, mt_ref = refs[i:i + 4]
            i += 4
        if has_res:
            r_ref = refs[i]
            i += 1
        o_ref, xscr = refs[i], refs[i + 1]

        # ---- prologue: stage (GN+SiLU fused) padded input, once per batch --
        @pl.when(pl.program_id(1) == 0)
        def _stage():
            x = x_ref[0].astype(jnp.float32).reshape(H * W, Cin)
            if has_gn:
                n = float(H * W * (Cin // G))
                s = jnp.sum(x, axis=0, keepdims=True)        # (1, Cin)
                sq = jnp.sum(x * x, axis=0, keepdims=True)   # (1, Cin)
                sg = jnp.dot(s, m_ref[...],
                             preferred_element_type=jnp.float32)   # (1, G)
                sqg = jnp.dot(sq, m_ref[...],
                              preferred_element_type=jnp.float32)  # (1, G)
                mean_g = sg / n
                var_g = sqg / n - mean_g * mean_g
                rstd_g = lax.rsqrt(var_g + eps)
                mean_c = jnp.dot(mean_g, mt_ref[...],
                                 preferred_element_type=jnp.float32)
                rstd_c = jnp.dot(rstd_g, mt_ref[...],
                                 preferred_element_type=jnp.float32)
                x = (x - mean_c) * rstd_c * g_ref[...] + be_ref[...]
            if silu:
                x = x * jax.nn.sigmoid(x)
            xscr[...] = jnp.zeros((Hp, Wpad, Cin), xscr.dtype)
            # rows centered (offset ph on the un-tiled major axis, free);
            # columns at origin -> aligned store, zero columns on the right.
            xscr[ph:ph + H, 0:W, :] = x.reshape(H, W, Cin).astype(xscr.dtype)

        # ---- kh*kw shifted bf16 matmuls -----------------------------------
        acc = jnp.zeros((HWp, Ct), jnp.float32)
        for dy in range(KH):
            x_dy = xscr[pl.ds(dy, H)].reshape(HWp, Cin)      # bf16, no relayout
            for dx in range(KW):
                prod = jnp.dot(x_dy, w_ref[dy, dx],
                               preferred_element_type=jnp.float32)
                shift = (pw - dx) % HWp
                if shift:
                    prod = pltpu.roll(prod, shift=shift, axis=0)
                acc = acc + prod
        acc = acc + b_ref[...]                                # (1, Ct) bcast
        out = acc.reshape(H, Wpad, Ct)[:, :W, :]
        if has_res:
            out = out + r_ref[0].astype(jnp.float32)
        o_ref[0] = out.astype(o_ref.dtype)

    return kernel


@functools.partial(jax.jit,
                   static_argnames=("silu", "has_gn", "has_res", "groups",
                                    "eps"))
def _conv2d(x, w, b, extras, *, silu, has_gn, has_res, groups, eps):
    B, H, W, Cin = x.shape
    KH, KW, _, Cout = w.shape
    tc = 256 if Cout % 256 == 0 else (128 if Cout % 128 == 0 else Cout)
    Wpad = _round_up(W + KW - 1, 16)
    Hp = H + KH - 1
    G = groups

    x = x.astype(jnp.bfloat16)
    w = w.astype(jnp.bfloat16)
    b = b.astype(jnp.float32).reshape(1, Cout)

    operands = [x, w, b]
    in_specs = [
        pl.BlockSpec((1, H, W, Cin), lambda bi, j: (bi, 0, 0, 0)),
        pl.BlockSpec((KH, KW, Cin, tc), lambda bi, j: (0, 0, 0, j)),
        pl.BlockSpec((1, tc), lambda bi, j: (0, j)),
    ]
    ei = 0
    if has_gn:
        gamma, beta = extras[0], extras[1]
        ei = 2
        cs = Cin // G
        gid = jnp.arange(Cin) // cs
        M = (gid[:, None] == jnp.arange(G)[None, :]).astype(jnp.float32)
        full2 = lambda bi, j: (0, 0)
        operands += [gamma.astype(jnp.float32).reshape(1, Cin),
                     beta.astype(jnp.float32).reshape(1, Cin),
                     M, jnp.transpose(M)]
        in_specs += [pl.BlockSpec((1, Cin), full2),
                     pl.BlockSpec((1, Cin), full2),
                     pl.BlockSpec((Cin, G), full2),
                     pl.BlockSpec((G, Cin), full2)]
    if has_res:
        operands += [extras[ei].astype(jnp.bfloat16)]
        in_specs += [pl.BlockSpec((1, H, W, tc), lambda bi, j: (bi, 0, 0, j))]

    kernel = _make_conv_kernel(H=H, W=W, KH=KH, KW=KW, Cin=Cin, Ct=tc,
                               Wpad=Wpad, has_gn=has_gn, silu=silu,
                               has_res=has_res, G=G, eps=eps)
    return pl.pallas_call(
        kernel,
        out_shape=jax.ShapeDtypeStruct((B, H, W, Cout), jnp.bfloat16),
        grid_spec=pltpu.PrefetchScalarGridSpec(
            num_scalar_prefetch=0,
            grid=(B, Cout // tc),
            in_specs=in_specs,
            out_specs=pl.BlockSpec((1, H, W, tc), lambda bi, j: (bi, 0, 0, j)),
            scratch_shapes=[pltpu.VMEM((Hp, Wpad, Cin), jnp.bfloat16)],
        ),
        compiler_params=pltpu.CompilerParams(
            dimension_semantics=("parallel", "arbitrary"),
            vmem_limit_bytes=_vmem_limit_bytes(),
        ),
    )(*operands)


def conv2d(x, w, b, *, gamma=None, beta=None, residual=None, silu=False,
           groups=32, eps=1e-6):
    extras = []
    has_gn = gamma is not None
    if has_gn:
        extras += [gamma, beta]
    has_res = residual is not None
    if has_res:
        extras += [residual]
    return _conv2d(x, w, b, tuple(extras), silu=silu, has_gn=has_gn,
                   has_res=has_res, groups=groups, eps=eps)


# --------------------------------------------------------------------------
# Standalone GroupNorm kernel (used only for the attention block's norm).
# Grid = (batch, channel tiles); tiles align with group boundaries.
# Note: one-pass E[x^2]-mean^2 variance in fp32 (acceptable for VAE ranges).
# --------------------------------------------------------------------------
def _gn_kernel(x_ref, g_ref, be_ref, m_ref, mt_ref, o_ref, *, H, W, TC, n,
               eps, silu):
    x = x_ref[0].astype(jnp.float32).reshape(H * W, TC)
    s = jnp.sum(x, axis=0, keepdims=True)
    sq = jnp.sum(x * x, axis=0, keepdims=True)
    sg = jnp.dot(s, m_ref[...], preferred_element_type=jnp.float32)
    sqg = jnp.dot(sq, m_ref[...], preferred_element_type=jnp.float32)
    mean_g = sg / n
    var_g = sqg / n - mean_g * mean_g
    rstd_g = lax.rsqrt(var_g + eps)
    mean_c = jnp.dot(mean_g, mt_ref[...], preferred_element_type=jnp.float32)
    rstd_c = jnp.dot(rstd_g, mt_ref[...], preferred_element_type=jnp.float32)
    y = (x - mean_c) * rstd_c * g_ref[...] + be_ref[...]
    if silu:
        y = y * jax.nn.sigmoid(y)
    o_ref[0] = y.reshape(H, W, TC).astype(o_ref.dtype)


@functools.partial(jax.jit, static_argnames=("groups", "eps", "silu"))
def group_norm(x, gamma, beta, *, groups=32, eps=1e-6, silu=False):
    B, H, W, C = x.shape
    G = groups
    cs = C // G
    TC = 128 if (C % 128 == 0 and 128 % cs == 0) else C
    Gt = TC // cs
    gid = jnp.arange(TC) // cs
    M = (gid[:, None] == jnp.arange(Gt)[None, :]).astype(jnp.float32)
    kernel = functools.partial(_gn_kernel, H=H, W=W, TC=TC,
                               n=float(H * W * cs), eps=eps, silu=silu)
    full2 = lambda bi, j: (0, 0)
    return pl.pallas_call(
        kernel,
        out_shape=jax.ShapeDtypeStruct((B, H, W, C), jnp.bfloat16),
        grid_spec=pltpu.PrefetchScalarGridSpec(
            num_scalar_prefetch=0,
            grid=(B, C // TC),
            in_specs=[
                pl.BlockSpec((1, H, W, TC), lambda bi, j: (bi, 0, 0, j)),
                pl.BlockSpec((1, TC), lambda bi, j: (0, j)),
                pl.BlockSpec((1, TC), lambda bi, j: (0, j)),
                pl.BlockSpec((TC, Gt), full2),
                pl.BlockSpec((Gt, TC), full2),
            ],
            out_specs=pl.BlockSpec((1, H, W, TC), lambda bi, j: (bi, 0, 0, j)),
        ),
        compiler_params=pltpu.CompilerParams(
            dimension_semantics=("parallel", "parallel"),
            vmem_limit_bytes=_vmem_limit_bytes(),
        ),
    )(x.astype(jnp.bfloat16), gamma.astype(jnp.float32).reshape(1, C),
      beta.astype(jnp.float32).reshape(1, C), M, jnp.transpose(M))


# --------------------------------------------------------------------------
# Attention: QKV projection, flash-style attention, out-proj (+ residual).
# --------------------------------------------------------------------------
def _qkv_kernel(x_ref, wq_ref, bq_ref, wk_ref, bk_ref, wv_ref, bv_ref,
                q_ref, k_ref, v_ref):
    x = x_ref[0]  # (TN, C) bf16
    for w_r, b_r, o_r in ((wq_ref, bq_ref, q_ref),
                          (wk_ref, bk_ref, k_ref),
                          (wv_ref, bv_ref, v_ref)):
        y = jnp.dot(x, w_r[...], preferred_element_type=jnp.float32) + b_r[...]
        o_r[0] = y.astype(o_r.dtype)


@jax.jit
def qkv_proj(x, wq, bq, wk, bk, wv, bv):
    B, N, C = x.shape
    TN = N if N <= 512 else 512
    full2 = lambda bi, i: (0, 0)
    blk = pl.BlockSpec((1, TN, C), lambda bi, i: (bi, i, 0))
    wspec = pl.BlockSpec((C, C), full2)
    bspec = pl.BlockSpec((1, C), full2)
    out_sds = jax.ShapeDtypeStruct((B, N, C), jnp.bfloat16)
    return pl.pallas_call(
        _qkv_kernel,
        out_shape=(out_sds, out_sds, out_sds),
        grid_spec=pltpu.PrefetchScalarGridSpec(
            num_scalar_prefetch=0,
            grid=(B, N // TN),
            in_specs=[blk, wspec, bspec, wspec, bspec, wspec, bspec],
            out_specs=(blk, blk, blk),
        ),
        compiler_params=pltpu.CompilerParams(
            dimension_semantics=("parallel", "parallel"),
            vmem_limit_bytes=_vmem_limit_bytes(),
        ),
    )(x.astype(jnp.bfloat16),
      wq.astype(jnp.bfloat16), bq.astype(jnp.float32).reshape(1, C),
      wk.astype(jnp.bfloat16), bk.astype(jnp.float32).reshape(1, C),
      wv.astype(jnp.bfloat16), bv.astype(jnp.float32).reshape(1, C))


def _flash_kernel(q_ref, k_ref, v_ref, o_ref, m_sc, l_sc, acc_sc, *, scale):
    kv = pl.program_id(1)

    @pl.when(kv == 0)
    def _():
        m_sc[...] = jnp.full(m_sc.shape, -jnp.inf, jnp.float32)
        l_sc[...] = jnp.zeros(l_sc.shape, jnp.float32)
        acc_sc[...] = jnp.zeros(acc_sc.shape, jnp.float32)

    s = jnp.einsum('bqd,bkd->bqk', q_ref[...], k_ref[...],
                   preferred_element_type=jnp.float32) * scale
    m_new = jnp.maximum(m_sc[...], s.max(-1, keepdims=True))
    alpha = jnp.exp(m_sc[...] - m_new)
    p = jnp.exp(s - m_new)
    l_sc[...] = alpha * l_sc[...] + p.sum(-1, keepdims=True)
    acc_sc[...] = alpha * acc_sc[...] + jnp.einsum(
        'bqk,bkd->bqd', p.astype(jnp.bfloat16), v_ref[...],
        preferred_element_type=jnp.float32)
    m_sc[...] = m_new

    @pl.when(kv == pl.num_programs(1) - 1)
    def _():
        o_ref[...] = (acc_sc[...] *
                      pl.reciprocal(l_sc[...], approx=True)).astype(o_ref.dtype)


@jax.jit
def flash_attention(q, k, v):
    B, N, C = q.shape
    scale = 1.0 / math.sqrt(C)  # single head -> head_dim == C
    tq = N if N <= 128 else 128
    tk = N if N <= 128 else 128
    kernel = functools.partial(_flash_kernel, scale=scale)
    return pl.pallas_call(
        kernel,
        out_shape=jax.ShapeDtypeStruct((B, N, C), jnp.bfloat16),
        grid_spec=pltpu.PrefetchScalarGridSpec(
            num_scalar_prefetch=0,
            grid=(N // tq, N // tk),
            in_specs=[
                pl.BlockSpec((B, tq, C), lambda qi, ki: (0, qi, 0)),
                pl.BlockSpec((B, tk, C), lambda qi, ki: (0, ki, 0)),
                pl.BlockSpec((B, tk, C), lambda qi, ki: (0, ki, 0)),
            ],
            out_specs=pl.BlockSpec((B, tq, C), lambda qi, ki: (0, qi, 0)),
            scratch_shapes=[pltpu.VMEM((B, tq, 1), jnp.float32),
                            pltpu.VMEM((B, tq, 1), jnp.float32),
                            pltpu.VMEM((B, tq, C), jnp.float32)],
        ),
        compiler_params=pltpu.CompilerParams(
            dimension_semantics=("parallel", "arbitrary"),
            vmem_limit_bytes=_vmem_limit_bytes(),
        ),
    )(q.astype(jnp.bfloat16), k.astype(jnp.bfloat16), v.astype(jnp.bfloat16))


def _proj_res_kernel(x_ref, w_ref, b_ref, r_ref, o_ref):
    y = jnp.dot(x_ref[0], w_ref[...],
                preferred_element_type=jnp.float32) + b_ref[...]
    y = y + r_ref[0].astype(jnp.float32)
    o_ref[0] = y.astype(o_ref.dtype)


@jax.jit
def proj_residual(x, w, b, res):
    B, N, C = x.shape
    Cout = w.shape[1]
    TN = N if N <= 512 else 512
    full2 = lambda bi, i: (0, 0)
    blk_in = pl.BlockSpec((1, TN, C), lambda bi, i: (bi, i, 0))
    blk_out = pl.BlockSpec((1, TN, Cout), lambda bi, i: (bi, i, 0))
    return pl.pallas_call(
        _proj_res_kernel,
        out_shape=jax.ShapeDtypeStruct((B, N, Cout), jnp.bfloat16),
        grid_spec=pltpu.PrefetchScalarGridSpec(
            num_scalar_prefetch=0,
            grid=(B, N // TN),
            in_specs=[blk_in, pl.BlockSpec((C, Cout), full2),
                      pl.BlockSpec((1, Cout), full2), blk_out],
            out_specs=blk_out,
        ),
        compiler_params=pltpu.CompilerParams(
            dimension_semantics=("parallel", "parallel"),
            vmem_limit_bytes=_vmem_limit_bytes(),
        ),
    )(x.astype(jnp.bfloat16), w.astype(jnp.bfloat16),
      b.astype(jnp.float32).reshape(1, Cout), res.astype(jnp.bfloat16))


# --------------------------------------------------------------------------
# Blocks
# --------------------------------------------------------------------------
def resnet_block(x, p, eps=1e-6):
    h = conv2d(x, p["conv1_w"], p["conv1_b"], gamma=p["norm1_g"],
               beta=p["norm1_b"], silu=True, eps=eps)
    if "short_w" in p:
        shortcut = conv2d(x, p["short_w"], p["short_b"])  # 1x1 shortcut conv
    else:
        shortcut = x
    # GN2 + SiLU + conv2 + residual add fused in one pallas_call.
    return conv2d(h, p["conv2_w"], p["conv2_b"], gamma=p["norm2_g"],
                  beta=p["norm2_b"], silu=True, residual=shortcut, eps=eps)


def vae_attention_block(x, p, eps=1e-6):
    B, H, W, C = x.shape
    resid = x.reshape(B, H * W, C)
    h = group_norm(x, p["norm_g"], p["norm_b"], groups=32, eps=eps, silu=False)
    h = h.reshape(B, H * W, C)
    q, k, v = qkv_proj(h, p["wq"], p["bq"], p["wk"], p["bk"],
                       p["wv"], p["bv"])
    att = flash_attention(q, k, v)
    out = proj_residual(att, p["wo"], p["bo"], resid)
    return out.reshape(B, H, W, C)


def upsample_block(x, p):
    # TODO(synk): fold the nearest-2x repeat into the conv prologue to save
    # one HBM round trip of the upsampled activation.
    x = jnp.repeat(jnp.repeat(x, 2, axis=1), 2, axis=2)
    return conv2d(x, p["conv_w"], p["conv_b"])


def sd3_vae_decoder(sample_nchw, params):
    scaling_factor = 1.5305
    shift_factor = 0.0609
    x = jnp.transpose(sample_nchw, (0, 2, 3, 1)).astype(jnp.float32)
    x = (x / scaling_factor + shift_factor).astype(jnp.bfloat16)
    x = conv2d(x, params["conv_in_w"], params["conv_in_b"])
    for blk in params["blocks"]:
        if blk["kind"] == "resnet":
            x = resnet_block(x, blk)
        elif blk["kind"] == "attn":
            x = vae_attention_block(x, blk)
        else:
            x = upsample_block(x, blk)
    # conv_norm_out + SiLU fused into conv_out; its 3 output channels are
    # padded to 128 lanes for dense stores and sliced back afterwards.
    w_out, b_out = params["conv_out_w"], params["conv_out_b"]
    cout = w_out.shape[-1]
    w_pad = jnp.pad(w_out, ((0, 0), (0, 0), (0, 0), (0, 128 - cout)))
    b_pad = jnp.pad(b_out, ((0, 128 - cout),))
    x = conv2d(x, w_pad, b_pad, gamma=params["norm_out_g"],
               beta=params["norm_out_b"], silu=True)
    x = x[..., :cout].astype(jnp.float32)
    return jnp.transpose(x, (0, 3, 1, 2))  # NHWC -> NCHW


# --------------------------------------------------------------------------
# Deterministic parameter init (shapes per SD3VAEDecoder.__init__)
# --------------------------------------------------------------------------
def _conv_params(key, kh, kw, cin, cout):
    k1, k2 = jax.random.split(key)
    std = 1.0 / math.sqrt(kh * kw * cin)
    w = jax.random.normal(k1, (kh, kw, cin, cout), jnp.float32) * std
    b = jax.random.normal(k2, (cout,), jnp.float32) * 0.01
    return w.astype(jnp.bfloat16), b


def _gn_params(key, c):
    k1, k2 = jax.random.split(key)
    g = 1.0 + 0.02 * jax.random.normal(k1, (c,), jnp.float32)
    b = 0.02 * jax.random.normal(k2, (c,), jnp.float32)
    return g, b


def _linear_params(key, cin, cout):
    k1, k2 = jax.random.split(key)
    std = 1.0 / math.sqrt(cin)
    w = jax.random.normal(k1, (cin, cout), jnp.float32) * std
    b = jax.random.normal(k2, (cout,), jnp.float32) * 0.01
    return w.astype(jnp.bfloat16), b


def init_decoder_params(key):
    counter = [0]

    def nk():
        counter[0] += 1
        return jax.random.fold_in(key, counter[0])

    params = {}
    params["conv_in_w"], params["conv_in_b"] = _conv_params(nk(), 3, 3, 16, 512)

    block_cfgs = [
        ("resnet", 512, 512), ("attn", 512, 512), ("resnet", 512, 512),
        ("resnet", 512, 512), ("resnet", 512, 512), ("resnet", 512, 512),
        ("up", 512, 512),
        ("resnet", 512, 512), ("resnet", 512, 512), ("resnet", 512, 512),
        ("up", 512, 512),
        ("resnet", 512, 256), ("resnet", 256, 256), ("resnet", 256, 256),
        ("up", 256, 256),
        ("resnet", 256, 128), ("resnet", 128, 128), ("resnet", 128, 128),
    ]
    blocks = []
    for kind, cin, cout in block_cfgs:
        p = {"kind": kind}
        if kind == "resnet":
            p["norm1_g"], p["norm1_b"] = _gn_params(nk(), cin)
            p["conv1_w"], p["conv1_b"] = _conv_params(nk(), 3, 3, cin, cout)
            p["norm2_g"], p["norm2_b"] = _gn_params(nk(), cout)
            p["conv2_w"], p["conv2_b"] = _conv_params(nk(), 3, 3, cout, cout)
            if cin != cout:
                p["short_w"], p["short_b"] = _conv_params(nk(), 1, 1, cin, cout)
        elif kind == "attn":
            p["norm_g"], p["norm_b"] = _gn_params(nk(), cin)
            p["wq"], p["bq"] = _linear_params(nk(), cin, cin)
            p["wk"], p["bk"] = _linear_params(nk(), cin, cin)
            p["wv"], p["bv"] = _linear_params(nk(), cin, cin)
            p["wo"], p["bo"] = _linear_params(nk(), cin, cin)
        else:  # UpSampler
            p["conv_w"], p["conv_b"] = _conv_params(nk(), 3, 3, cin, cin)
        blocks.append(p)
    params["blocks"] = blocks

    params["norm_out_g"], params["norm_out_b"] = _gn_params(nk(), 128)
    params["conv_out_w"], params["conv_out_b"] = _conv_params(nk(), 3, 3, 128, 3)
    return params


if __name__ == "__main__":
    root = jax.random.PRNGKey(0)
    params = init_decoder_params(jax.random.fold_in(root, 1))
    # SD3 latent: 16 channels; small spatial 8x8 -> decoded 64x64 RGB.
    sample = jax.random.normal(jax.random.fold_in(root, 2),
                               (2, 16, 8, 8), jnp.float32)
    out = sd3_vae_decoder(sample, params)
    out = jax.block_until_ready(out)
    assert out.shape == (2, 3, 64, 64), out.shape
    assert bool(jnp.all(jnp.isfinite(out)))
    print("KERNEL_OK")
</pallas_src>

<mosaic_0001>
module attributes {stable_mosaic.version = 11 : i64} {
  func.func @kernel(%arg0: i32, %arg1: i32, %arg2: memref<1x8x8x16xbf16, #tpu.memory_space<vmem>>, %arg3: memref<3x3x16x256xbf16, #tpu.memory_space<vmem>>, %arg4: memref<1x256xf32, #tpu.memory_space<vmem>>, %arg5: memref<1x8x8x256xbf16, #tpu.memory_space<vmem>>, %arg6: memref<10x16x16xbf16, #tpu.memory_space<vmem>>) attributes {dimension_semantics = [#tpu.dimension_semantics<parallel>, #tpu.dimension_semantics<arbitrary>], iteration_bounds = array<i64: 2, 2>, scalar_prefetch = 0 : i64, scratch_operands = 1 : i64, tpu.core_type = #tpu.core_type<tc>, window_params = [{transform_indices = @transform_0, window_bounds = array<i64: 1, 8, 8, 16>}, {transform_indices = @transform_1, window_bounds = array<i64: 3, 3, 16, 256>}, {transform_indices = @transform_2, window_bounds = array<i64: 1, 256>}, {transform_indices = @transform_3, window_bounds = array<i64: 1, 8, 8, 256>}]} {
    %c0_i32 = arith.constant 0 : i32
    %0 = arith.cmpi eq, %arg1, %c0_i32 : i32
    %1 = arith.extui %0 : i1 to i32
    %c0_i32_0 = arith.constant 0 : i32
    %2 = arith.cmpi ne, %1, %c0_i32_0 : i32
    scf.if %2 {
      %c0_62 = arith.constant 0 : index
      %c0_63 = arith.constant 0 : index
      %c0_64 = arith.constant 0 : index
      %c0_65 = arith.constant 0 : index
      %61 = vector.load %arg2[%c0_62, %c0_63, %c0_64, %c0_65] : memref<1x8x8x16xbf16, #tpu.memory_space<vmem>>, vector<1x8x8x16xbf16>
      %62 = vector.shape_cast %61 : vector<1x8x8x16xbf16> to vector<8x8x16xbf16>
      %63 = arith.extf %62 : vector<8x8x16xbf16> to vector<8x8x16xf32>
      %64 = vector.shape_cast %63 : vector<8x8x16xf32> to vector<64x16xf32>
      %cst_66 = arith.constant 0.000000e+00 : bf16
      %65 = vector.broadcast %cst_66 : bf16 to vector<10x16x16xbf16>
      %c0_67 = arith.constant 0 : index
      %c0_68 = arith.constant 0 : index
      %c0_69 = arith.constant 0 : index
      %66 = vector.load %arg6[%c0_67, %c0_68, %c0_69] : memref<10x16x16xbf16, #tpu.memory_space<vmem>>, vector<10x16x16xbf16>
      tpu.vector_store %arg6[%c0_67, %c0_68, %c0_69], %65 {strides = array<i32>} : memref<10x16x16xbf16, #tpu.memory_space<vmem>>, vector<10x16x16xbf16>,
      %67 = vector.shape_cast %64 : vector<64x16xf32> to vector<8x8x16xf32>
      %68 = arith.truncf %67 : vector<8x8x16xf32> to vector<8x8x16xbf16>
      %c1_70 = arith.constant 1 : index
      %c0_71 = arith.constant 0 : index
      %c0_72 = arith.constant 0 : index
      %69 = vector.load %arg6[%c1_70, %c0_71, %c0_72] : memref<10x16x16xbf16, #tpu.memory_space<vmem>>, vector<8x8x16xbf16>
      tpu.vector_store %arg6[%c1_70, %c0_71, %c0_72], %68 {strides = array<i32>} : memref<10x16x16xbf16, #tpu.memory_space<vmem>>, vector<8x8x16xbf16>,
    } else {
    }
    %cst = arith.constant 0.000000e+00 : f32
    %3 = vector.broadcast %cst : f32 to vector<128x256xf32>
    %c0 = arith.constant 0 : index
    %c0_1 = arith.constant 0 : index
    %c0_2 = arith.constant 0 : index
    %4 = vector.load %arg6[%c0, %c0_1, %c0_2] : memref<10x16x16xbf16, #tpu.memory_space<vmem>>, vector<8x16x16xbf16>
    %5 = vector.shape_cast %4 : vector<8x16x16xbf16> to vector<128x16xbf16>
    %c0_3 = arith.constant 0 : index
    %c0_4 = arith.constant 0 : index
    %c0_5 = arith.constant 0 : index
    %c0_6 = arith.constant 0 : index
    %6 = vector.load %arg3[%c0_3, %c0_4, %c0_5, %c0_6] : memref<3x3x16x256xbf16, #tpu.memory_space<vmem>>, vector<1x1x16x256xbf16>
    %7 = vector.shape_cast %6 : vector<1x1x16x256xbf16> to vector<16x256xbf16>
    %cst_7 = arith.constant dense<0.000000e+00> : vector<128x256xf32>
    %8 = tpu.matmul %5, %7, %cst_7 {dimension_numbers = #tpu.dot_dimension_numbers<[1], [0], [0], [1], [0, 0, 1, 1], [], []>} : vector<128x16xbf16>, vector<16x256xbf16>, vector<128x256xf32> -> vector<128x256xf32>
    %c1_i32 = arith.constant 1 : i32
    %9 = tpu.dynamic_rotate %8 by %c1_i32 dim 0 : vector<128x256xf32>, i32 -> vector<128x256xf32>
    %10 = arith.addf %3, %9 : vector<128x256xf32>
    %c0_8 = arith.constant 0 : index
    %c1 = arith.constant 1 : index
    %c0_9 = arith.constant 0 : index
    %c0_10 = arith.constant 0 : index
    %11 = vector.load %arg3[%c0_8, %c1, %c0_9, %c0_10] : memref<3x3x16x256xbf16, #tpu.memory_space<vmem>>, vector<1x1x16x256xbf16>
    %12 = vector.shape_cast %11 : vector<1x1x16x256xbf16> to vector<16x256xbf16>
    %cst_11 = arith.constant dense<0.000000e+00> : vector<128x256xf32>
    %13 = tpu.matmul %5, %12, %cst_11 {dimension_numbers = #tpu.dot_dimension_numbers<[1], [0], [0], [1], [0, 0, 1, 1], [], []>} : vector<128x16xbf16>, vector<16x256xbf16>, vector<128x256xf32> -> vector<128x256xf32>
    %14 = arith.addf %10, %13 : vector<128x256xf32>
    %c0_12 = arith.constant 0 : index
    %c2 = arith.constant 2 : index
    %c0_13 = arith.constant 0 : index
    %c0_14 = arith.constant 0 : index
    %15 = vector.load %arg3[%c0_12, %c2, %c0_13, %c0_14] : memref<3x3x16x256xbf16, #tpu.memory_space<vmem>>, vector<1x1x16x256xbf16>
    %16 = vector.shape_cast %15 : vector<1x1x16x256xbf16> to vector<16x256xbf16>
    %cst_15 = arith.constant dense<0.000000e+00> : vector<128x256xf32>
    %17 = tpu.matmul %5, %16, %cst_15 {dimension_numbers = #tpu.dot_dimension_numbers<[1], [0], [0], [1], [0, 0, 1, 1], [], []>} : vector<128x16xbf16>, vector<16x256xbf16>, vector<128x256xf32> -> vector<128x256xf32>
    %c127_i32 = arith.constant 127 : i32
    %18 = tpu.dynamic_rotate %17 by %c127_i32 dim 0 : vector<128x256xf32>, i32 -> vector<128x256xf32>
    %19 = arith.addf %14, %18 : vector<128x256xf32>
    %c1_16 = arith.constant 1 : index
    %c0_17 = arith.constant 0 : index
    %c0_18 = arith.constant 0 : index
    %20 = vector.load %arg6[%c1_16, %c0_17, %c0_18] : memref<10x16x16xbf16, #tpu.memory_space<vmem>>, vector<8x16x16xbf16>
    %21 = vector.shape_cast %20 : vector<8x16x16xbf16> to vector<128x16xbf16>
    %c1_19 = arith.constant 1 : index
    %c0_20 = arith.constant 0 : index
    %c0_21 = arith.constant 0 : index
    %c0_22 = arith.constant 0 : index
    %22 = vector.load %arg3[%c1_19, %c0_20, %c0_21, %c0_22] : memref<3x3x16x256xbf16, #tpu.memory_space<vmem>>, vector<1x1x16x256xbf16>
    %23 = vector.shape_cast %22 : vector<1x1x16x256xbf16> to vector<16x256xbf16>
    %cst_23 = arith.constant dense<0.000000e+00> : vector<128x256xf32>
    %24 = tpu.matmul %21, %23, %cst_23 {dimension_numbers = #tpu.dot_dimension_numbers<[1], [0], [0], [1], [0, 0, 1, 1], [], []>} : vector<128x16xbf16>, vector<16x256xbf16>, vector<128x256xf32> -> vector<128x256xf32>
    %c1_i32_24 = arith.constant 1 : i32
    %25 = tpu.dynamic_rotate %24 by %c1_i32_24 dim 0 : vector<128x256xf32>, i32 -> vector<128x256xf32>
    %26 = arith.addf %19, %25 : vector<128x256xf32>
    %c1_25 = arith.constant 1 : index
    %c1_26 = arith.constant 1 : index
    %c0_27 = arith.constant 0 : index
    %c0_28 = arith.constant 0 : index
    %27 = vector.load %arg3[%c1_25, %c1_26, %c0_27, %c0_28] : memref<3x3x16x256xbf16, #tpu.memory_space<vmem>>, vector<1x1x16x256xbf16>
    %28 = vector.shape_cast %27 : vector<1x1x16x256xbf16> to vector<16x256xbf16>
    %cst_29 = arith.constant dense<0.000000e+00> : vector<128x256xf32>
    %29 = tpu.matmul %21, %28, %cst_29 {dimension_numbers = #tpu.dot_dimension_numbers<[1], [0], [0], [1], [0, 0, 1, 1], [], []>} : vector<128x16xbf16>, vector<16x256xbf16>, vector<128x256xf32> -> vector<128x256xf32>
    %30 = arith.addf %26, %29 : vector<128x256xf32>
    %c1_30 = arith.constant 1 : index
    %c2_31 = arith.constant 2 : index
    %c0_32 = arith.constant 0 : index
    %c0_33 = arith.constant 0 : index
    %31 = vector.load %arg3[%c1_30, %c2_31, %c0_32, %c0_33] : memref<3x3x16x256xbf16, #tpu.memory_space<vmem>>, vector<1x1x16x256xbf16>
    %32 = vector.shape_cast %31 : vector<1x1x16x256xbf16> to vector<16x256xbf16>
    %cst_34 = arith.constant dense<0.000000e+00> : vector<128x256xf32>
    %33 = tpu.matmul %21, %32, %cst_34 {dimension_numbers = #tpu.dot_dimension_numbers<[1], [0], [0], [1], [0, 0, 1, 1], [], []>} : vector<128x16xbf16>, vector<16x256xbf16>, vector<128x256xf32> -> vector<128x256xf32>
    %c127_i32_35 = arith.constant 127 : i32
    %34 = tpu.dynamic_rotate %33 by %c127_i32_35 dim 0 : vector<128x256xf32>, i32 -> vector<128x256xf32>
    %35 = arith.addf %30, %34 : vector<128x256xf32>
    %c2_36 = arith.constant 2 : index
    %c0_37 = arith.constant 0 : index
    %c0_38 = arith.constant 0 : index
    %36 = vector.load %arg6[%c2_36, %c0_37, %c0_38] : memref<10x16x16xbf16, #tpu.memory_space<vmem>>, vector<8x16x16xbf16>
    %37 = vector.shape_cast %36 : vector<8x16x16xbf16> to vector<128x16xbf16>
    %c2_39 = arith.constant 2 : index
    %c0_40 = arith.constant 0 : index
    %c0_41 = arith.constant 0 : index
    %c0_42 = arith.constant 0 : index
    %38 = vector.load %arg3[%c2_39, %c0_40, %c0_41, %c0_42] : memref<3x3x16x256xbf16, #tpu.memory_space<vmem>>, vector<1x1x16x256xbf16>
    %39 = vector.shape_cast %38 : vector<1x1x16x256xbf16> to vector<16x256xbf16>
    %cst_43 = arith.constant dense<0.000000e+00> : vector<128x256xf32>
    %40 = tpu.matmul %37, %39, %cst_43 {dimension_numbers = #tpu.dot_dimension_numbers<[1], [0], [0], [1], [0, 0, 1, 1], [], []>} : vector<128x16xbf16>, vector<16x256xbf16>, vector<128x256xf32> -> vector<128x256xf32>
    %c1_i32_44 = arith.constant 1 : i32
    %41 = tpu.dynamic_rotate %40 by %c1_i32_44 dim 0 : vector<128x256xf32>, i32 -> vector<128x256xf32>
    %42 = arith.addf %35, %41 : vector<128x256xf32>
    %c2_45 = arith.constant 2 : index
    %c1_46 = arith.constant 1 : index
    %c0_47 = arith.constant 0 : index
    %c0_48 = arith.constant 0 : index
    %43 = vector.load %arg3[%c2_45, %c1_46, %c0_47, %c0_48] : memref<3x3x16x256xbf16, #tpu.memory_space<vmem>>, vector<1x1x16x256xbf16>
    %44 = vector.shape_cast %43 : vector<1x1x16x256xbf16> to vector<16x256xbf16>
    %cst_49 = arith.constant dense<0.000000e+00> : vector<128x256xf32>
    %45 = tpu.matmul %37, %44, %cst_49 {dimension_numbers = #tpu.dot_dimension_numbers<[1], [0], [0], [1], [0, 0, 1, 1], [], []>} : vector<128x16xbf16>, vector<16x256xbf16>, vector<128x256xf32> -> vector<128x256xf32>
    %46 = arith.addf %42, %45 : vector<128x256xf32>
    %c2_50 = arith.constant 2 : index
    %c2_51 = arith.constant 2 : index
    %c0_52 = arith.constant 0 : index
    %c0_53 = arith.constant 0 : index
    %47 = vector.load %arg3[%c2_50, %c2_51, %c0_52, %c0_53] : memref<3x3x16x256xbf16, #tpu.memory_space<vmem>>, vector<1x1x16x256xbf16>
    %48 = vector.shape_cast %47 : vector<1x1x16x256xbf16> to vector<16x256xbf16>
    %cst_54 = arith.constant dense<0.000000e+00> : vector<128x256xf32>
    %49 = tpu.matmul %37, %48, %cst_54 {dimension_numbers = #tpu.dot_dimension_numbers<[1], [0], [0], [1], [0, 0, 1, 1], [], []>} : vector<128x16xbf16>, vector<16x256xbf16>, vector<128x256xf32> -> vector<128x256xf32>
    %c127_i32_55 = arith.constant 127 : i32
    %50 = tpu.dynamic_rotate %49 by %c127_i32_55 dim 0 : vector<128x256xf32>, i32 -> vector<128x256xf32>
    %51 = arith.addf %46, %50 : vector<128x256xf32>
    %c0_56 = arith.constant 0 : index
    %c0_57 = arith.constant 0 : index
    %52 = vector.load %arg4[%c0_56, %c0_57] : memref<1x256xf32, #tpu.memory_space<vmem>>, vector<1x256xf32>
    %53 = vector.broadcast %52 : vector<1x256xf32> to vector<128x256xf32>
    %54 = arith.addf %51, %53 : vector<128x256xf32>
    %55 = vector.shape_cast %54 : vector<128x256xf32> to vector<8x16x256xf32>
    %56 = vector.extract_strided_slice %55 {offsets = [0, 0, 0], sizes = [8, 8, 256], strides = [1, 1, 1]} : vector<8x16x256xf32> to vector<8x8x256xf32>
    %57 = arith.truncf %56 : vector<8x8x256xf32> to vector<8x8x256xbf16>
    %c0_58 = arith.constant 0 : index
    %c0_59 = arith.constant 0 : index
    %c0_60 = arith.constant 0 : index
    %c0_61 = arith.constant 0 : index
    %58 = vector.load %arg5[%c0_58, %c0_59, %c0_60, %c0_61] : memref<1x8x8x256xbf16, #tpu.memory_space<vmem>>, vector<1x8x8x256xbf16>
    %59 = vector.shape_cast %58 : vector<1x8x8x256xbf16> to vector<8x8x256xbf16>
    %60 = vector.shape_cast %57 : vector<8x8x256xbf16> to vector<1x8x8x256xbf16>
    tpu.vector_store %arg5[%c0_58, %c0_59, %c0_60, %c0_61], %60 {strides = array<i32>} : memref<1x8x8x256xbf16, #tpu.memory_space<vmem>>, vector<1x8x8x256xbf16>,
    return
  }
  func.func @transform_0(%arg0: i32, %arg1: i32) -> (i32, i32, i32, i32) {
    %c0_i32 = arith.constant 0 : i32
    %c0_i32_0 = arith.constant 0 : i32
    %c0_i32_1 = arith.constant 0 : i32
    %c0_i32_2 = arith.constant 0 : i32
    return %arg0, %c0_i32, %c0_i32_0, %c0_i32_1 : i32, i32, i32, i32
  }
  func.func @transform_1(%arg0: i32, %arg1: i32) -> (i32, i32, i32, i32) {
    %c0_i32 = arith.constant 0 : i32
    %c0_i32_0 = arith.constant 0 : i32
    %c0_i32_1 = arith.constant 0 : i32
    %c0_i32_2 = arith.constant 0 : i32
    return %c0_i32, %c0_i32_0, %c0_i32_1, %arg1 : i32, i32, i32, i32
  }
  func.func @transform_2(%arg0: i32, %arg1: i32) -> (i32, i32) {
    %c0_i32 = arith.constant 0 : i32
    %c0_i32_0 = arith.constant 0 : i32
    return %c0_i32, %arg1 : i32, i32
  }
  func.func @transform_3(%arg0: i32, %arg1: i32) -> (i32, i32, i32, i32) {
    %c0_i32 = arith.constant 0 : i32
    %c0_i32_0 = arith.constant 0 : i32
    %c0_i32_1 = arith.constant 0 : i32
    return %arg0, %c0_i32, %c0_i32_0, %arg1 : i32, i32, i32, i32
  }
}

</mosaic_0001>

<bundles_post_ra>
// kernel: _conv2d.1
= control target key start
LH: loop header
LB: loop body
LE: loop exit
PB: predicated region body
PF: predicated region fallthrough
CT: control target
= control target key end

     0   :  { %s3910_s0 = inlined_call_operand.hbm [shape: bf16[2,8,8,16], index: 0, kind: input, shape index: {}]   ;;  %s3911_s1 = inlined_call_operand.hbm [shape: bf16[3,3,16,512], index: 1, kind: input, shape index: {}]   ;;  %s3912_s2 = inlined_call_operand.vmem [shape: f32[1,512], index: 2, kind: input, shape index: {}]   ;;  %s3913_s3 = inlined_call_operand.hbm [shape: bf16[2,8,8,512], index: 3, kind: output, shape index: {}]  }
   0x1   :  { %3920 = sst [smem:[#allocation18_spill]] %s3910_s0 }
   0x2   :  { %3921 = sst [smem:[#allocation19_spill]] %s3911_s1 }
   0x3   :  { %3922 = sst [smem:[#allocation20_spill]] %s3913_s3 }
   0x4   :  { %8 = vsyncpa [#allocation4], 0 }
   0x5   :  { %10 = vsyncpa [#allocation4 + $0x1], 0 }
   0x6   :  { %11 = vsyncpa [#allocation7], 0 }
   0x7   :  { %13 = vsyncpa [#allocation7 + $0x1], 0 }
   0x8   :  { %14 = vsyncpa [#allocation5], 0 }
   0x9   :  { %16 = vsyncpa [#allocation5 + $0x1], 0  ;;  %s2909_s12 = smov 0   ;;  %s2911_s13 = smov 0  }
   0xa   :  { %s2913_s14 = smov 0   ;;  %s2915_s15 = smov 0  }
   0xb   :  { %s2917_s16 = smov 0   ;;  %s2919_s17 = smov 0  }
   0xc   :  { %s2921_s18 = smov 0   ;;  %s2923_s19 = smov 0  }
   0xd   :  { %s2925_s20 = smov 0   ;;  %s2927_s21 = smov 0  }
   0xe   :  { %s2929_s22 = smov 0   ;;  %s2931_s23 = smov 0  }
   0xf   :  { %s2933_s24 = smov 0   ;;  %s2935_s25 = smov 0  }
  0x10 LB: > { %3923 = sst [smem:[#allocation12_spill]] %s2862_s22  ;;  %s2306_s26 = sadd.s32 4294967295, %s2874_s25   ;;  %s2874_s25 = sphi %s2935_s25, %s22_s25   ;;  %s2870_s24 = sphi %s2933_s24, %s3951_s24   ;;  %s2866_s23 = sphi %s2931_s23, %s3962_s23   ;;  %s2862_s22 = sphi %s2929_s22, %s3949_s22   ;;  %s2858_s21 = sphi %s2927_s21, %s3961_s21   ;;  %s2854_s20 = sphi %s2925_s20, %s3960_s20   ;;  %s2850_s19 = sphi %s2923_s19, %s3959_s19   ;;  %s2846_s18 = sphi %s2921_s18, %s3958_s18   ;;  %s2842_s17 = sphi %s2919_s17, %s3957_s17   ;;  %s2838_s16 = sphi %s2917_s16, %s3956_s16   ;;  %s2834_s15 = sphi %s2915_s15, %s3955_s15   ;;  %s2830_s14 = sphi %s2913_s14, %s3954_s14   ;;  %s2826_s13 = sphi %s2911_s13, %s3953_s13   ;;  %s2822_s12 = sphi %s2909_s12, %s3952_s12  }
  0x11   : > { %3924 = sst [smem:[#allocation13_spill]] %s2870_s24  ;;  %p48_p0 = scmp.ne.s32.totalorder %s2854_s20, %s2850_s19 }
  0x12   : > { %p49_p1 = scmp.eq.s32.totalorder %s2874_s25, 0  ;;  %p54_p2 = scmp.ne.s32.totalorder %s2850_s19, %s2846_s18 }
  0x13   : > { %p2984_p3 = scmp.eq.s32.totalorder %s2306_s26, 0  ;;  %p2988_p4 = scmp.eq.s32.totalorder %s2306_s26, 3 }
  0x14   : > { %p50_p5 = por %p49_p1, %p48_p0  ;;  %p2495_p7 = scmp.lt.s32.totalorder %s2874_s25, 4 }
  0x15   : > { %p2996_p6 = por %p2984_p3, %p54_p2  ;;  %s158_s5 = sand.u32 1, %s2854_s20  }
  0x16   : > { %s2464_s6 = sshll.u32 %s2870_s24, 9  ;;  %s2310_s7 = sshll.u32 %s158_s5, 5 }
  0x17   : > { %s3928_s0 = sld [smem:[#allocation18_spill]]  ;;  %s162_s11 = scalar_lea.vmem [#allocation3], %s2310_s7 }
  0x18   : > { %s169_s18 = sshll.u32 %s162_s11, 4  ;;  %p3008_p8 = pnand %p2495_p7, %p50_p5  ;;  %s170_s18 = int_to_ptr.vmem [resolvable:$true] %s169_s18 }
  0x19   : > { %s159_s28 = scalar_lea.sflag [#allocation4], %s158_s5  ;;  %s2683_s27 = scalar_lea.vmem %s170_s18, 512 }
  0x1a   : > { %p2672_p9 = pneg %p3008_p8  ;;  %p2684_p10 = scmp.ne.s32.totalorder %s170_s18, %s2683_s27 }
  0x1b   : > { %s2876_s3 = smov [#allocation3]  }
  0x1c   : > { %p2686_p11 = pnand %p2684_p10, %p2672_p9  ;;  %s2688_s22 = sshll.u32 %s2876_s3, 4  ;;  %s2689_s22 = int_to_ptr.vmem [resolvable:$false] %s2688_s22 }
  0x1d   : > { %s168_s10 = scalar_lea.hbm %s3928_s0, %s2464_s6  ;;  %s2690_s6 = scalar_lea.vmem %s2689_s22, 1024 }
  0x1e   : > { %p2687_p12 = pneg %p2686_p11  ;;  %p2691_p13 = scmp.lt.s32.totalorder %s170_s18, %s2689_s22 }
  0x1f   : > { %p2692_p0 = scmp.lt.s32.totalorder %s2690_s6, %s2683_s27 }
  0x21   : > { %p2693_p2 = por %p2692_p0, %p2691_p13 }
  0x23   : > { %p2694_p5 = pnand %p2693_p2, %p2687_p12 }
  0x25   : > { %2697 = shalt.err (!%p2694_p5)
}
  0x26   : > { %s2877_s7 = smov 64   ;;  %s2878_s3 = smov 4  }
  0x27   : > { %2487 = dma.hbm_to_vmem [thread:$0]  (!%p3008_p8), %s168_s10, 512, %s170_s18, %s159_s28, %s2877_s7, %s2877_s7, %s2878_s3  }
  0x28   : > { %p2315_p9 = scmp.ge.s32.totalorder %s2874_s25, 1  ;;  %p206_p10 = scmp.lt.s32.totalorder %s2874_s25, 5 }
  0x29   : > { %s2307_s27 = sadd.s32 4294967294, %s2874_s25   ;;  %s31_s5 = sadd.s32 1, %s2866_s23 }
  0x2a   : > { %p3018_p11 = pnand %p2315_p9, %p206_p10  ;;  %s67_s8 = sadd.s32 1, %s2842_s17 }
  0x2b   : > { %p32_p12 = scmp.ge.s32.totalorder %s31_s5, 2  ;;  %p74_p13 = scmp.ne.s32.totalorder %s2842_s17, %s2838_s16 }
  0x2c   : > { %p80_p0 = scmp.ne.s32.totalorder %s2838_s16, %s2834_s15  ;;  %s121_s9 = sadd.s32 1, %s2830_s14 }
  0x2d   : > { %s3964_s5 = smov (%p32_p12, %s31_s5), 0  ;;  %s3932_s28 = sadd.s32 1, %s2870_s24 }
  0x2e   : > { %3931 = sst [smem:[#allocation14_spill]] %s3964_s5  ;;  %s3966_s28 = smov (!%p32_p12, %s3932_s28), %s2870_s24 }
  0x2f   : > { %s64_s10 = ssub.s32 %s2866_s23, %s3964_s5  ;;  %p3039_p8 = por %p74_p13, %p49_p1 }
  0x30   : > { %p36_p2 = scmp.ge.s32.totalorder %s3966_s28, 2  ;;  %p65_p5 = scmp.eq.s32.totalorder %s64_s10, 0 }
  0x31   : > { %p3045_p9 = por %p80_p0, %p2984_p3  ;;  %p131_p10 = scmp.ne.s32.totalorder %s2830_s14, %s2826_s13 }
  0x32   : > { %s3968_s28 = smov (%p36_p2, %s3966_s28), 0  ;;  %p137_p13 = scmp.ne.s32.totalorder %s2826_s13, %s2822_s12 }
  0x33   : > { %3935 = sst [smem:[#allocation15_spill]] %s3968_s28  ;;  %s38_s26 = ssub.s32 %s2870_s24, %s3968_s28 }
  0x34   : > { %s3054_s18 = scalar_select %p65_p5, %s2842_s17, %s67_s8  }
  0x35   : > { %p3060_p1 = por %p2988_p4, %p131_p10  ;;  %p39_p12 = scmp.eq.s32.totalorder %s38_s26, 0 }
  0x36   : > { %3936 = sst [smem:[#allocation16_spill]] %s3054_s18  ;;  %s118_s29 = sor.u32 %s64_s10, %s38_s26 }
  0x37   : > { %s3937_s6 = scalar_select %p3060_p1, 1, 0 }
  0x38   : > { %p119_p3 = scmp.eq.s32.totalorder %s118_s29, 0  ;;  %s3939_s7 = sadd.s32 1, %s2854_s20 }
  0x39   : > { %3938 = sst [smem:[#allocation17_spill]] %s3937_s6  ;;  %p138_p0 = scmp.eq.s32.totalorder %s2307_s27, 3 }
  0x3a   : > { %s3069_s3 = scalar_select %p39_p12, %s2854_s20, %s3939_s7  }
  0x3b   : > { %s3072_s0 = scalar_select %p119_p3, %s2830_s14, %s121_s9  }
  0x3c   : > { %s179_s8 = sand.u32 1, %s2842_s17   ;;  %p3075_p2 = por %p138_p0, %p137_p13 }
  0x3d   : > { %s2476_s5 = smul.u32 144, %s179_s8  ;;  %s2465_s28 = sshll.u32 %s2866_s23, 7 }
  0x3e   : > { %s3940_s30 = scalar_select %p3075_p2, 1, 0 }
  0x3f   : > { %s3941_s1 = sld [smem:[#allocation19_spill]]  ;;  %s183_s10 = scalar_lea.vmem [#allocation6], %s2476_s5 }
  0x40   : > { %s190_s26 = sshll.u32 %s183_s10, 4  ;;  %p3087_p4 = pnand %p2495_p7, %p3039_p8  ;;  %s191_s26 = int_to_ptr.vmem [resolvable:$true] %s190_s26 }
  0x41   : > { %s180_s27 = scalar_lea.sflag [#allocation7], %s179_s8  ;;  %s2711_s9 = scalar_lea.vmem %s191_s26, 2304 }
  0x42   : > { %p2700_p5 = pneg %p3087_p4  ;;  %p2712_p10 = scmp.ne.s32.totalorder %s191_s26, %s2711_s9 }
  0x43   : > { %s2879_s7 = smov [#allocation6]  }
  0x44   : > { %p2714_p12 = pnand %p2712_p10, %p2700_p5  ;;  %s2716_s24 = sshll.u32 %s2879_s7, 4  ;;  %s2717_s24 = int_to_ptr.vmem [resolvable:$false] %s2716_s24 }
  0x45   : > { %s189_s6 = scalar_lea.hbm %s3941_s1, %s2465_s28  ;;  %s2718_s5 = scalar_lea.vmem %s2717_s24, 4608 }
  0x46   : > { %p2715_p3 = pneg %p2714_p12  ;;  %p2719_p13 = scmp.lt.s32.totalorder %s191_s26, %s2717_s24 }
  0x47   : > { %p2720_p0 = scmp.lt.s32.totalorder %s2718_s5, %s2711_s9 }
  0x49   : > { %p2721_p2 = por %p2720_p0, %p2719_p13 }
  0x4b   : > { %p2722_p7 = pnand %p2721_p2, %p2715_p3 }
  0x4d   : > { %2725 = shalt.err (!%p2722_p7)
}
  0x4e   : > { %s2880_s28 = smov 256   ;;  %s2881_s11 = smov 128  }
  0x4f   : > { %s2882_s18 = smov 8   ;;  %210 = sbr.rel (%p3018_p11) target bundleno = 623 (0x26f), region = 32 }
  0x50   : > { %2490 = dma.hbm_to_vmem [thread:$0]  (!%p3087_p4), %s189_s6, 2304, %s191_s26, %s180_s27, %s2880_s28, %s2881_s11, %s2882_s18  }
  0x51   : > { %s212_s8 = sand.u32 (!%p3018_p11), 1, %s2850_s19  }
  0x52   : > { %s2316_s10 = sshll.u32 (!%p3018_p11), %s212_s8, 5  ;;  %s213_s7 = scalar_lea.sflag (!%p3018_p11), [#allocation4], %s212_s8 }
  0x53   : > { %s3098_s1 = scalar_lea.vmem (!%p3018_p11), [#allocation3], %s2316_s10 }
  0x54   : > { %2809 = dma.done.wait (%p2996_p6), %s213_s7, 512  }
  0x55   : > { %2811 = vsyncadd (%p2996_p6), %s213_s7, 4294966784  ;;  %s221_s9 = sand.u32 1, %s2838_s16  }
  0x56   : > { %s2477_s29 = smul.u32 144, %s221_s9  ;;  %s222_s6 = scalar_lea.sflag [#allocation7], %s221_s9 }
  0x58   : > { %s3105_s26 = scalar_lea.vmem [#allocation6], %s2477_s29 }
  0x59   : > { %2813 = dma.done.wait (%p3045_p9), %s222_s6, 2304  }
  0x5a   : > { %2815 = vsyncadd (%p3045_p9), %s222_s6, 4294964992  ;;  %s254_s22 = sand.u32 1, %s2826_s13   ;;  %s3113_s27 = sshll.u32 %s2858_s21, 1 }
  0x5b   : > { %s2317_s4 = sshll.u32 %s254_s22, 6  ;;  %p259_p6 = scmp.lt.s32.totalorder %s3113_s27, 3 }
  0x5c   : > { %s3125_s15 = scalar_lea.vmem [#allocation8], %s2317_s4  ;;  %p2319_p11 = scmp.ne.s32.totalorder %s2858_s21, 0 }
  0x5d   : > { %s3119_s24 = scalar_select %p259_p6, %s3113_s27, 3 }
  0x5e   : > { %268 = sbr.rel (%p2319_p11) target bundleno = 114 (0x72), region = 44 }
  0x5f   : > { %s261_s11 = scalar_lea.vmem %s3912_s2, %s3119_s24 }
  0x63   : > { %vm277_vm0 = vcmask 125952   ;;  %v269_v0 = vld [vmem:[%s3098_s1] sm:$0xf]  ;;  %v270_v1 = vld [vmem:[%s3098_s1 + $0x4] sm:$0xf]  ;;  %v2883_v2 = vmov 0  }
  0x64   : > { %280 = vst.msk [vmem:[#allocation2 + $0x8] sm:$0xf] %vm277_vm0, %v2883_v2  ;;  %278 = vst.msk [vmem:[#allocation2] sm:$0xf] %vm277_vm0, %v2883_v2  ;;  %v271_v3 = vld [vmem:[%s3098_s1 + $0x8] sm:$0xf] }
  0x65   : > { %279 = vst.msk [vmem:[#allocation2 + $0x4] sm:$0xf] %vm277_vm0, %v2883_v2  ;;  %281 = vst.msk [vmem:[#allocation2 + $0xc] sm:$0xf] %vm277_vm0, %v2883_v2  ;;  %v272_v4 = vld [vmem:[%s3098_s1 + $0xc] sm:$0xf] }
  0x66   : > { %282 = vst.msk [vmem:[#allocation2 + $0x10] sm:$0xf] %vm277_vm0, %v2883_v2  ;;  %283 = vst.msk [vmem:[#allocation2 + $0x14] sm:$0xf] %vm277_vm0, %v2883_v2  ;;  %v273_v5 = vld [vmem:[%s3098_s1 + $0x10] sm:$0xf] }
  0x67   : > { %284 = vst.msk [vmem:[#allocation2 + $0x18] sm:$0xf] %vm277_vm0, %v2883_v2  ;;  %285 = vst.msk [vmem:[#allocation2 + $0x1c] sm:$0xf] %vm277_vm0, %v2883_v2  ;;  %v274_v6 = vld [vmem:[%s3098_s1 + $0x14] sm:$0xf] }
  0x68   : > { %286 = vst.msk [vmem:[#allocation2 + $0x20] sm:$0xf] %vm277_vm0, %v2883_v2  ;;  %287 = vst.msk [vmem:[#allocation2 + $0x24] sm:$0xf] %vm277_vm0, %v2883_v2  ;;  %v275_v7 = vld [vmem:[%s3098_s1 + $0x18] sm:$0xf] }
  0x69   : > { %288 = vst.msk [vmem:[#allocation2 + $0x28] sm:$0xf] %vm277_vm0, %v2883_v2  ;;  %289 = vst.msk [vmem:[#allocation2 + $0x2c] sm:$0xf] %vm277_vm0, %v2883_v2  ;;  %v276_v8 = vld [vmem:[%s3098_s1 + $0x1c] sm:$0xf] }
  0x6a   : > { %290 = vst.msk [vmem:[#allocation2 + $0x30] sm:$0xf] %vm277_vm0, %v2883_v2  ;;  %291 = vst.msk [vmem:[#allocation2 + $0x34] sm:$0xf] %vm277_vm0, %v2883_v2 }
  0x6b   : > { %292 = vst.msk [vmem:[#allocation2 + $0x38] sm:$0xf] %vm277_vm0, %v2883_v2  ;;  %293 = vst.msk [vmem:[#allocation2 + $0x3c] sm:$0xf] %vm277_vm0, %v2883_v2 }
  0x6c   : > { %294 = vst.msk [vmem:[#allocation2 + $0x40] sm:$0xf] %vm277_vm0, %v2883_v2  ;;  %295 = vst.msk [vmem:[#allocation2 + $0x44] sm:$0xf] %vm277_vm0, %v2883_v2 }
  0x6d   : > { %296 = vst.msk [vmem:[#allocation2 + $0x48] sm:$0xf] %vm277_vm0, %v2883_v2  ;;  %297 = vst.msk [vmem:[#allocation2 + $0x4c] sm:$0xf] %vm277_vm0, %v2883_v2 }
  0x6e   : > { %299 = vst.msk [vmem:[#allocation2 + $0x8] sm:$0xf] %vm277_vm0, %v269_v0  ;;  %300 = vst.msk [vmem:[#allocation2 + $0x10] sm:$0xf] %vm277_vm0, %v270_v1 }
  0x6f   : > { %301 = vst.msk [vmem:[#allocation2 + $0x18] sm:$0xf] %vm277_vm0, %v271_v3  ;;  %302 = vst.msk [vmem:[#allocation2 + $0x20] sm:$0xf] %vm277_vm0, %v272_v4 }
  0x70   : > { %303 = vst.msk [vmem:[#allocation2 + $0x28] sm:$0xf] %vm277_vm0, %v273_v5  ;;  %304 = vst.msk [vmem:[#allocation2 + $0x30] sm:$0xf] %vm277_vm0, %v274_v6 }
  0x71   : > { %305 = vst.msk [vmem:[#allocation2 + $0x38] sm:$0xf] %vm277_vm0, %v275_v7  ;;  %306 = vst.msk [vmem:[#allocation2 + $0x40] sm:$0xf] %vm277_vm0, %v276_v8 }
  0x72 PF: > { %v2619_v9 = vld [vmem:[%s3105_s26 + $0x4] ss:$8 sps:$4 sm:$0xff]   ;;  %v2621_v10 = vld [vmem:[%s3105_s26] ss:$8 sps:$4 sm:$0xff]   ;;  %v2884_v11 = vmov 0   ;;  %vm375_vm1 = vcmask 130048   ;;  %v545_v51 = vlaneseq }
  0x73   : > { %432 = vmatprep.mubr.bf16.mxu0 %v2884_v11  ;;  %472 = vmatprep.mubr.bf16.mxu1 %v2884_v11  ;;  %v2622_v12 = vld [vmem:[#allocation2] sm:$0xff]   ;;  %s3943_s18 = sld [smem:[#allocation12_spill]]  ;;  %s2187_s29 = sshll.u32 %s3125_s15, 4  ;;  %s3830_s29 = int_to_ptr.vmem [resolvable:$true] %s2187_s29 }
  0x74   : > { %414 = vmatprep.subr.bf16.mxu0 %v2619_v9  ;;  %2474 = vmatprep.subr.bf16.mxu1 %v2619_v9  ;;  %v2624_v14 = vld [vmem:[%s3105_s26 + $0x20] ss:$8 sps:$4 sm:$0xff]   ;;  %v2626_v15 = vld [vmem:[%s3105_s26 + $0x24] ss:$8 sps:$4 sm:$0xff]   ;;  %v2627_v16 = vld [vmem:[%s3105_s26 + $0x10] ss:$8 sps:$4 sm:$0xff]  }
  0x75   : > { %415 = vmatpush1.bf16.msra.mxu0 %v2621_v10  ;;  %2475 = vmatpush1.bf16.msra.mxu1 %v2621_v10  ;;  %v2629_v17 = vld [vmem:[%s3105_s26 + $0x14] ss:$8 sps:$4 sm:$0xff]   ;;  %v2638_v20 = vld [vmem:[%s3105_s26 + $0x44] ss:$8 sps:$4 sm:$0xff]   ;;  %v2636_v26 = vld [vmem:[%s3105_s26 + $0x40] ss:$8 sps:$4 sm:$0xff]  }
  0x76   : > { %v2623_v13 = vld [vmem:[#allocation2 + $0x20] sm:$0xff]   ;;  %733 = vmatprep.subr.bf16.mxu0 %v2626_v15  ;;  %607 = vmatprep.subr.bf16.mxu1 %v2629_v17  ;;  %v2630_v18 = vld [vmem:[#allocation2 + $0x8] sm:$0xff]   ;;  %v2632_v22 = vld [vmem:[#allocation2 + $0x10] sm:$0xff]   ;;  %v3317_v57 = vshrl.u32 %v545_v51, 7  ;;  %s3835_s24 = scalar_lea.sflag [#allocation5], %s254_s22  ;;  %s2726_s5 = scalar_lea.vmem %s3830_s29, 1024 }
  0x77   : > { %v2631_v19 = vld [vmem:[#allocation2 + $0x28] sm:$0xff]   ;;  %v2633_v23 = vld [vmem:[#allocation2 + $0x30] sm:$0xff]   ;;  %v2634_v24 = vld [vmem:[#allocation2 + $0x18] sm:$0xff]   ;;  %p2727_p8 = scmp.ne.s32.totalorder %s3830_s29, %s2726_s5  ;;  %s2885_s28 = smov [#allocation8]  }
  0x78   : > { %2330 = vmatmul.mubr.msk.bf16.vlgmr.msra.gmra.mxu0 %vm375_vm1, %v2622_v12  ;;  %2334 = vmatmul.mubr.msk.bf16.vlgmr.msra.gmra.mxu1 %vm375_vm1, %v2623_v13  ;;  %v2641_v21 = vld [vmem:[%s3105_s26 + $0x34] ss:$8 sps:$4 sm:$0xff]   ;;  %v2639_v27 = vld [vmem:[%s3105_s26 + $0x30] ss:$8 sps:$4 sm:$0xff]   ;;  %v2645_v28 = vld [vmem:[%s3105_s26 + $0x64] ss:$8 sps:$4 sm:$0xff]  }
  0x79   : > { %734 = vmatpush1.bf16.msra.mxu0 %v2624_v14  ;;  %608 = vmatpush1.bf16.msra.mxu1 %v2627_v16  ;;  %v2635_v25 = vld [vmem:[#allocation2 + $0x38] sm:$0xff]   ;;  %v2642_v30 = vld [vmem:[#allocation2 + $0x8] sm:$0xff]   ;;  %v2649_v35 = vld [vmem:[#allocation2 + $0x10] sm:$0xff]   ;;  %vm547_vm2 = vcmp.lt.s32.totalorder %v3317_v57, 1  ;;  %vm864_vm3 = vcmp.lt.s32.totalorder %v3317_v57, 7  ;;  %s2460_s8 = sshll.u32 %s3943_s18, 5  ;;  %p2728_p9 = pnand %p2727_p8, %p3060_p1 }
  0x7a   : > { %442 = vmatprep.mubr.bf16.mxu0 %v2884_v11  ;;  %482 = vmatprep.mubr.bf16.mxu1 %v2884_v11  ;;  %v2648_v29 = vld [vmem:[%s3105_s26 + $0x54] ss:$8 sps:$4 sm:$0xff]   ;;  %v2643_v31 = vld [vmem:[%s3105_s26 + $0x60] ss:$8 sps:$4 sm:$0xff]   ;;  %v2646_v32 = vld [vmem:[%s3105_s26 + $0x50] ss:$8 sps:$4 sm:$0xff]   ;;  %s2184_s10 = sadd.s32 %s2460_s8, %s3113_s27 }
  0x7b   : > { %1195 = vmatprep.subr.bf16.mxu0 %v2638_v20  ;;  %1005 = vmatprep.subr.bf16.mxu1 %v2641_v21  ;;  %v2659_v33 = vld [vmem:[%s3105_s26 + $0x84] ss:$8 sps:$4 sm:$0xff]   ;;  %v2662_v34 = vld [vmem:[%s3105_s26 + $0x74] ss:$8 sps:$4 sm:$0xff]   ;;  %v2657_v43 = vld [vmem:[%s3105_s26 + $0x80] ss:$8 sps:$4 sm:$0xff]   ;;  %p2729_p2 = pneg %p2728_p9 }
  0x7c   : > { %v2650_v36 = vld [vmem:[#allocation2 + $0x18] sm:$0xff]   ;;  %v2651_v37 = vld [vmem:[#allocation2 + $0x20] sm:$0xff]   ;;  %v2652_v38 = vld [vmem:[#allocation2 + $0x28] sm:$0xff]   ;;  %s2461_s9 = sshll.u32 %s2184_s10, 6  ;;  %s3945_s27 = sld [smem:[#allocation20_spill]] }
  0x7d   : > { %v2653_v39 = vld [vmem:[#allocation2 + $0x30] sm:$0xff]   ;;  %v3254_v40 = vld [vmem:[#allocation2 + $0x38] sm:$0xff]   ;;  %v3262_v41 = vld [vmem:[#allocation2 + $0x40] sm:$0xff]  }
  0x7e   : > { %v3270_v42 = vld [vmem:[#allocation2 + $0x10] sm:$0xff]   ;;  %v3279_v45 = vld [vmem:[#allocation2 + $0x18] sm:$0xff]   ;;  %v3286_v46 = vld [vmem:[#allocation2 + $0x20] sm:$0xff]  }
  0x7f   : > { %v2660_v44 = vld [vmem:[%s3105_s26 + $0x70] ss:$8 sps:$4 sm:$0xff]  }
  0x80   : > { %2331 = vmatmul.mubr.msk.bf16.gmra.mxu0 %vm375_vm1, %v2630_v18  ;;  %2335 = vmatmul.mubr.msk.bf16.gmra.mxu1 %vm375_vm1, %v2631_v19  ;;  %v3293_v47 = vld [vmem:[#allocation2 + $0x28] sm:$0xff]   ;;  %v3300_v48 = vld [vmem:[#allocation2 + $0x30] sm:$0xff]   ;;  %v3315_v56 = vld [vmem:[#allocation2 + $0x38] sm:$0xff]  }
  0x81   : > { %452 = vmatprep.mubr.bf16.mxu0 %v2884_v11  ;;  %492 = vmatprep.mubr.bf16.mxu1 %v2884_v11 }
  0x82   : > { %s3828_s4 = scalar_lea.hbm %s3945_s27, %s2461_s9 }
  0x88   : > { %2332 = vmatmul.mubr.msk.bf16.gmra.mxu0 %vm375_vm1, %v2632_v22  ;;  %2336 = vmatmul.mubr.msk.bf16.gmra.mxu1 %vm375_vm1, %v2633_v23 }
  0x89   : > { %462 = vmatprep.mubr.bf16.mxu0 %v2884_v11  ;;  %502 = vmatprep.mubr.bf16.mxu1 %v2884_v11 }
  0x90   : > { %2333 = vmatmul.mubr.msk.bf16.gmra.mxu0 %vm375_vm1, %v2634_v24  ;;  %2337 = vmatmul.mubr.msk.bf16.gmra.mxu1 %vm375_vm1, %v2635_v25 }
  0x91   : > { %625 = vmatprep.mubr.bf16.mxu1 %v2884_v11  ;;  %751 = vmatprep.mubr.bf16.mxu0 %v2884_v11 }
  0x98   : > { %2342 = vmatmul.mubr.msk.bf16.vlgmr.msra.gmra.mxu1 %vm375_vm1, %v2622_v12  ;;  %2354 = vmatmul.mubr.msk.bf16.vlgmr.msra.gmra.mxu0 %vm375_vm1, %v2622_v12 }
  0x99   : > { %1196 = vmatpush1.bf16.msra.mxu0 %v2636_v26  ;;  %1006 = vmatpush1.bf16.msra.mxu1 %v2639_v27 }
  0x9a   : > { %633 = vmatprep.mubr.bf16.mxu1 %v2884_v11  ;;  %761 = vmatprep.mubr.bf16.mxu0 %v2884_v11 }
  0x9b   : > { %1592 = vmatprep.subr.bf16.mxu0 %v2645_v28  ;;  %1321 = vmatprep.subr.bf16.mxu1 %v2648_v29 }
  0xa0   : > { %2343 = vmatmul.mubr.msk.bf16.gmra.mxu1 %vm375_vm1, %v2630_v18  ;;  %2355 = vmatmul.mubr.msk.bf16.gmra.mxu0 %vm375_vm1, %v2630_v18 }
  0xa1   : > { %641 = vmatprep.mubr.bf16.mxu1 %v2884_v11  ;;  %771 = vmatprep.mubr.bf16.mxu0 %v2884_v11 }
  0xa8   : > { %2344 = vmatmul.mubr.msk.bf16.gmra.mxu1 %vm375_vm1, %v2632_v22  ;;  %2356 = vmatmul.mubr.msk.bf16.gmra.mxu0 %vm375_vm1, %v2632_v22 }
  0xa9   : > { %649 = vmatprep.mubr.bf16.mxu1 %v2884_v11  ;;  %781 = vmatprep.mubr.bf16.mxu0 %v2884_v11 }
  0xb0   : > { %2345 = vmatmul.mubr.msk.bf16.gmra.mxu1 %vm375_vm1, %v2634_v24  ;;  %2357 = vmatmul.mubr.msk.bf16.gmra.mxu0 %vm375_vm1, %v2634_v24 }
  0xb1   : > { %657 = vmatprep.mubr.bf16.mxu1 %v2884_v11  ;;  %791 = vmatprep.mubr.bf16.mxu0 %v2884_v11 }
  0xb8   : > { %2346 = vmatmul.mubr.msk.bf16.gmra.mxu1 %vm375_vm1, %v2623_v13  ;;  %2358 = vmatmul.mubr.msk.bf16.gmra.mxu0 %vm375_vm1, %v2623_v13  ;;  %v3333_v13 = vld [vmem:[#allocation2 + $0x40] sm:$0xff]  }
  0xb9   : > { %665 = vmatprep.mubr.bf16.mxu1 %v2884_v11  ;;  %801 = vmatprep.mubr.bf16.mxu0 %v2884_v11 }
  0xc0   : > { %2347 = vmatmul.mubr.msk.bf16.gmra.mxu1 %vm375_vm1, %v2631_v19  ;;  %2359 = vmatmul.mubr.msk.bf16.gmra.mxu0 %vm375_vm1, %v2631_v19 }
  0xc1   : > { %673 = vmatprep.mubr.bf16.mxu1 %v2884_v11  ;;  %811 = vmatprep.mubr.bf16.mxu0 %v2884_v11 }
  0xc8   : > { %2348 = vmatmul.mubr.msk.bf16.gmra.mxu1 %vm375_vm1, %v2633_v23  ;;  %2360 = vmatmul.mubr.msk.bf16.gmra.mxu0 %vm375_vm1, %v2633_v23 }
  0xc9   : > { %681 = vmatprep.mubr.bf16.mxu1 %v2884_v11  ;;  %821 = vmatprep.mubr.bf16.mxu0 %v2884_v11 }
  0xd0   : > { %2349 = vmatmul.mubr.msk.bf16.gmra.mxu1 %vm375_vm1, %v2635_v25  ;;  %2361 = vmatmul.mubr.msk.bf16.gmra.mxu0 %vm375_vm1, %v2635_v25 }
  0xd1   : > { %1023 = vmatprep.mubr.bf16.mxu1 %v2884_v11  ;;  %1213 = vmatprep.mubr.bf16.mxu0 %v2884_v11 }
  0xd8   : > { %2374 = vmatmul.mubr.msk.bf16.vlgmr.msra.gmra.mxu1 %vm375_vm1, %v2642_v30  ;;  %2386 = vmatmul.mubr.msk.bf16.vlgmr.msra.gmra.mxu0 %vm375_vm1, %v2642_v30 }
  0xd9   : > { %1593 = vmatpush1.bf16.msra.mxu0 %v2643_v31  ;;  %1322 = vmatpush1.bf16.msra.mxu1 %v2646_v32 }
  0xda   : > { %1033 = vmatprep.mubr.bf16.mxu1 %v2884_v11  ;;  %1221 = vmatprep.mubr.bf16.mxu0 %v2884_v11 }
  0xdb   : > { %1908 = vmatprep.subr.bf16.mxu0 %v2659_v33  ;;  %1782 = vmatprep.subr.bf16.mxu1 %v2662_v34  ;;  %v3357_v34 = vld [vmem:[#allocation2 + $0x48] sm:$0xff]  }
  0xe0   : > { %2375 = vmatmul.mubr.msk.bf16.gmra.mxu1 %vm375_vm1, %v2649_v35  ;;  %2387 = vmatmul.mubr.msk.bf16.gmra.mxu0 %vm375_vm1, %v2649_v35 }
  0xe1   : > { %1043 = vmatprep.mubr.bf16.mxu1 %v2884_v11  ;;  %1229 = vmatprep.mubr.bf16.mxu0 %v2884_v11 }
  0xe8   : > { %2376 = vmatmul.mubr.msk.bf16.gmra.mxu1 %vm375_vm1, %v2650_v36  ;;  %2388 = vmatmul.mubr.msk.bf16.gmra.mxu0 %vm375_vm1, %v2650_v36 }
  0xe9   : > { %1053 = vmatprep.mubr.bf16.mxu1 %v2884_v11  ;;  %1237 = vmatprep.mubr.bf16.mxu0 %v2884_v11 }
  0xf0   : > { %2377 = vmatmul.mubr.msk.bf16.gmra.mxu1 %vm375_vm1, %v2651_v37  ;;  %2389 = vmatmul.mubr.msk.bf16.gmra.mxu0 %vm375_vm1, %v2651_v37 }
  0xf1   : > { %1063 = vmatprep.mubr.bf16.mxu1 %v2884_v11  ;;  %1245 = vmatprep.mubr.bf16.mxu0 %v2884_v11 }
  0xf8   : > { %2378 = vmatmul.mubr.msk.bf16.gmra.mxu1 %vm375_vm1, %v2652_v38  ;;  %2390 = vmatmul.mubr.msk.bf16.gmra.mxu0 %vm375_vm1, %v2652_v38 }
  0xf9   : > { %1073 = vmatprep.mubr.bf16.mxu1 %v2884_v11  ;;  %1253 = vmatprep.mubr.bf16.mxu0 %v2884_v11 }
 0x100   : > { %2379 = vmatmul.mubr.msk.bf16.gmra.mxu1 %vm375_vm1, %v2653_v39  ;;  %2391 = vmatmul.mubr.msk.bf16.gmra.mxu0 %vm375_vm1, %v2653_v39 }
 0x101   : > { %1083 = vmatprep.mubr.bf16.mxu1 %v2884_v11  ;;  %1261 = vmatprep.mubr.bf16.mxu0 %v2884_v11 }
 0x108   : > { %2380 = vmatmul.mubr.msk.bf16.gmra.mxu1 %vm375_vm1, %v3254_v40  ;;  %2392 = vmatmul.mubr.msk.bf16.gmra.mxu0 %vm375_vm1, %v3254_v40 }
 0x109   : > { %1093 = vmatprep.mubr.bf16.mxu1 %v2884_v11  ;;  %1269 = vmatprep.mubr.bf16.mxu0 %v2884_v11 }
 0x110   : > { %2381 = vmatmul.mubr.msk.bf16.gmra.mxu1 %vm375_vm1, %v3262_v41  ;;  %2393 = vmatmul.mubr.msk.bf16.gmra.mxu0 %vm375_vm1, %v3262_v41 }
 0x111   : > { %1339 = vmatprep.mubr.bf16.mxu1 %v2884_v11  ;;  %1610 = vmatprep.mubr.bf16.mxu0 %v2884_v11 }
 0x118   : > { %2398 = vmatmul.mubr.msk.bf16.vlgmr.msra.gmra.mxu1 %vm375_vm1, %v2642_v30  ;;  %2418 = vmatmul.mubr.msk.bf16.vlgmr.msra.gmra.mxu0 %vm375_vm1, %v3270_v42 }
 0x119   : > { %1909 = vmatpush1.bf16.msra.mxu0 %v2657_v43  ;;  %1783 = vmatpush1.bf16.msra.mxu1 %v2660_v44 }
 0x11a   : > { %1349 = vmatprep.mubr.bf16.mxu1 %v2884_v11  ;;  %1620 = vmatprep.mubr.bf16.mxu0 %v2884_v11 }
 0x120   : > { %2399 = vmatmul.mubr.msk.bf16.gmra.mxu1 %vm375_vm1, %v2649_v35  ;;  %2419 = vmatmul.mubr.msk.bf16.gmra.mxu0 %vm375_vm1, %v3279_v45 }
 0x121   : > { %1359 = vmatprep.mubr.bf16.mxu1 %v2884_v11  ;;  %1630 = vmatprep.mubr.bf16.mxu0 %v2884_v11 }
 0x128   : > { %2400 = vmatmul.mubr.msk.bf16.gmra.mxu1 %vm375_vm1, %v2650_v36  ;;  %2420 = vmatmul.mubr.msk.bf16.gmra.mxu0 %vm375_vm1, %v3286_v46 }
 0x129   : > { %1369 = vmatprep.mubr.bf16.mxu1 %v2884_v11  ;;  %1640 = vmatprep.mubr.bf16.mxu0 %v2884_v11 }
 0x130   : > { %2401 = vmatmul.mubr.msk.bf16.gmra.mxu1 %vm375_vm1, %v2651_v37  ;;  %2421 = vmatmul.mubr.msk.bf16.gmra.mxu0 %vm375_vm1, %v3293_v47 }
 0x131   : > { %1379 = vmatprep.mubr.bf16.mxu1 %v2884_v11  ;;  %1650 = vmatprep.mubr.bf16.mxu0 %v2884_v11 }
 0x138   : > { %v3302_v49 = vpop.f32.mrf.mxu0  ;;  %v3304_v50 = vpop.f32.mrf.mxu1  ;;  %2402 = vmatmul.mubr.msk.bf16.gmra.mxu1 %vm375_vm1, %v2652_v38  ;;  %2422 = vmatmul.mubr.msk.bf16.gmra.mxu0 %vm375_vm1, %v3300_v48 }
 0x139   : > { %1389 = vmatprep.mubr.bf16.mxu1 %v2884_v11  ;;  %1660 = vmatprep.mubr.bf16.mxu0 %v2884_v11 }
 0x13a   : > { %v3311_v52 = vpop.f32.mrf.mxu0  ;;  %v3313_v53 = vpop.f32.mrf.mxu1 }
 0x13c   : > { %v438_v54 = vpop.f32.mrf.mxu0  ;;  %v478_v55 = vpop.f32.mrf.mxu1 }
 0x13d   : > { %v515_v62 = vrot.slane %v438_v54, 7  ;;  %v531_v63 = vrot.slane %v478_v55, 7 }
 0x13e   : > { %v440_v58 = vpop.f32.mrf.mxu0  ;;  %v480_v59 = vpop.f32.mrf.mxu1 }
 0x13f   : > { %v516_v2 = vrot.slane %v440_v58, 7  ;;  %v532_v3 = vrot.slane %v480_v59, 7 }
 0x140   : > { %v444_v60 = vpop.f32.mrf.mxu0  ;;  %v484_v61 = vpop.f32.mrf.mxu1  ;;  %2403 = vmatmul.mubr.msk.bf16.gmra.mxu1 %vm375_vm1, %v2653_v39  ;;  %2423 = vmatmul.mubr.msk.bf16.gmra.mxu0 %vm375_vm1, %v3315_v56 }
 0x141   : > { %v517_v0 = vrot.slane %v444_v60, 7  ;;  %v533_v1 = vrot.slane %v484_v61, 7  ;;  %1399 = vmatprep.mubr.bf16.mxu1 %v2884_v11  ;;  %1670 = vmatprep.mubr.bf16.mxu0 %v2884_v11 }
 0x142   : > { %v446_v4 = vpop.f32.mrf.mxu0  ;;  %v486_v5 = vpop.f32.mrf.mxu1 }
 0x143   : > { %v518_v6 = vrot.slane %v446_v4, 7  ;;  %v534_v7 = vrot.slane %v486_v5, 7  ;;  %v3327_v8 = vsel %vm547_vm2, %v515_v62, %v517_v0  ;;  %v3331_v9 = vsel %vm547_vm2, %v531_v63, %v533_v1 }
 0x144   : > { %v448_v10 = vpop.f32.mrf.mxu0  ;;  %v488_v12 = vpop.f32.mrf.mxu1  ;;  %v513_v0 = vrot.slane %v3302_v49, 7  ;;  %v529_v1 = vrot.slane %v3304_v50, 7 }
 0x145   : > { %v3337_v14 = vsel %vm547_vm2, %v516_v2, %v518_v6  ;;  %v3341_v15 = vsel %vm547_vm2, %v532_v3, %v534_v7  ;;  %v519_v20 = vrot.slane %v448_v10, 7  ;;  %v535_v21 = vrot.slane %v488_v12, 7 }
 0x146   : > { %v450_v16 = vpop.f32.mrf.mxu0  ;;  %v490_v17 = vpop.f32.mrf.mxu1  ;;  %v514_v10 = vrot.slane %v3311_v52, 7  ;;  %v530_v12 = vrot.slane %v3313_v53, 7 }
 0x147   : > { %v520_v24 = vrot.slane %v450_v16, 7  ;;  %v536_v25 = vrot.slane %v490_v17, 7 }
 0x148   : > { %v454_v18 = vpop.f32.mrf.mxu0  ;;  %v494_v19 = vpop.f32.mrf.mxu1  ;;  %2404 = vmatmul.mubr.msk.bf16.gmra.mxu1 %vm375_vm1, %v3254_v40  ;;  %2424 = vmatmul.mubr.msk.bf16.gmra.mxu0 %vm375_vm1, %v3333_v13 }
 0x149   : > { %v521_v22 = vrot.slane %v454_v18, 7  ;;  %v537_v23 = vrot.slane %v494_v19, 7  ;;  %1409 = vmatprep.mubr.bf16.mxu1 %v2884_v11  ;;  %1680 = vmatprep.mubr.bf16.mxu0 %v2884_v11 }
 0x14a   : > { %v456_v26 = vpop.f32.mrf.mxu0  ;;  %v496_v27 = vpop.f32.mrf.mxu1 }
 0x14b   : > { %v522_v28 = vrot.slane %v456_v26, 7  ;;  %v538_v29 = vrot.slane %v496_v27, 7  ;;  %v3351_v30 = vsel %vm547_vm2, %v519_v20, %v521_v22  ;;  %v3355_v31 = vsel %vm547_vm2, %v535_v21, %v537_v23 }
 0x14c   : > { %v458_v32 = vpop.f32.mrf.mxu0  ;;  %v498_v33 = vpop.f32.mrf.mxu1 }
 0x14d   : > { %v3361_v35 = vsel %vm547_vm2, %v520_v24, %v522_v28  ;;  %v3365_v36 = vsel %vm547_vm2, %v536_v25, %v538_v29  ;;  %v523_v43 = vrot.slane %v458_v32, 7  ;;  %v539_v44 = vrot.slane %v498_v33, 7 }
 0x14e   : > { %v460_v37 = vpop.f32.mrf.mxu0  ;;  %v500_v38 = vpop.f32.mrf.mxu1 }
 0x14f   : > { %v524_v55 = vrot.slane %v460_v37, 7  ;;  %v540_v58 = vrot.slane %v500_v38, 7 }
 0x150   : > { %v464_v39 = vpop.f32.mrf.mxu0  ;;  %v504_v40 = vpop.f32.mrf.mxu1  ;;  %2405 = vmatmul.mubr.msk.bf16.gmra.mxu1 %vm375_vm1, %v3262_v41  ;;  %2425 = vmatmul.mubr.msk.bf16.gmra.mxu0 %vm375_vm1, %v3357_v34 }
 0x151   : > { %v525_v51 = vrot.slane %v464_v39, 7  ;;  %v541_v54 = vrot.slane %v504_v40, 7  ;;  %1800 = vmatprep.mubr.bf16.mxu1 %v2884_v11  ;;  %1926 = vmatprep.mubr.bf16.mxu0 %v2884_v11 }
 0x152   : > { %v466_v59 = vpop.f32.mrf.mxu0  ;;  %v506_v60 = vpop.f32.mrf.mxu1 }
 0x153   : > { %v526_v61 = vrot.slane %v466_v59, 7  ;;  %v542_v62 = vrot.slane %v506_v60, 7  ;;  %v3375_v41 = vsel %vm547_vm2, %v523_v43, %v525_v51  ;;  %v3379_v63 = vsel %vm547_vm2, %v539_v44, %v541_v54 }
 0x154   : > { %v468_v2 = vpop.f32.mrf.mxu0  ;;  %v508_v3 = vpop.f32.mrf.mxu1 }
 0x155   : > { %v527_v4 = vrot.slane %v468_v2, 7  ;;  %v543_v5 = vrot.slane %v508_v3, 7  ;;  %v3385_v6 = vsel %vm547_vm2, %v524_v55, %v526_v61  ;;  %v3389_v7 = vsel %vm547_vm2, %v540_v58, %v542_v62 }
 0x156   : > { %v470_v16 = vpop.f32.mrf.mxu0  ;;  %v510_v49 = vpop.f32.mrf.mxu1 }
 0x157   : > { %v528_v17 = vrot.slane %v470_v16, 7  ;;  %v544_v50 = vrot.slane %v510_v49, 7  ;;  %v562_v18 = vsel %vm547_vm2, %v543_v5, %v513_v0  ;;  %v3397_v19 = vsel %vm547_vm2, %v527_v4, %v529_v1 }
 0x158   : > { %v627_v20 = vpop.f32.mrf.mxu1  ;;  %v753_v21 = vpop.f32.mrf.mxu0  ;;  %2430 = vmatmul.mubr.msk.bf16.vlgmr.msra.gmra.mxu1 %vm375_vm1, %v3270_v42  ;;  %2442 = vmatmul.mubr.msk.bf16.vlgmr.msra.gmra.mxu0 %vm375_vm1, %v3270_v42 }
 0x159   : > { %v690_v52 = vadd.f32 %v627_v20, %v562_v18  ;;  %v563_v53 = vsel %vm547_vm2, %v544_v50, %v514_v10  ;;  %1808 = vmatprep.mubr.bf16.mxu1 %v2884_v11  ;;  %1936 = vmatprep.mubr.bf16.mxu0 %v2884_v11  ;;  %v3409_v22 = vsel %vm547_vm2, %v528_v17, %v530_v12  ;;  %v832_v42 = vrot.slane %v753_v21, 1 }
 0x15a   : > { %v629_v23 = vpop.f32.mrf.mxu1  ;;  %v755_v24 = vpop.f32.mrf.mxu0 }
 0x15b   : > { %v691_v25 = vadd.f32 %v629_v23, %v563_v53  ;;  %v833_v33 = vrot.slane %v755_v24, 1 }
 0x15c   : > { %v631_v26 = vpop.f32.mrf.mxu1  ;;  %v757_v27 = vpop.f32.mrf.mxu0 }
 0x15d   : > { %v834_v28 = vrot.slane %v757_v27, 1 }
 0x15e   : > { %v632_v29 = vpop.f32.mrf.mxu1  ;;  %v759_v32 = vpop.f32.mrf.mxu0 }
 0x15f   : > { %v879_v37 = vsel %vm864_vm3, %v832_v42, %v834_v28  ;;  %v835_v38 = vrot.slane %v759_v32, 1 }
 0x160   : > { %v3414_v39 = vadd.f32 %v879_v37, %v690_v52  ;;  %v635_v40 = vpop.f32.mrf.mxu1  ;;  %v763_v43 = vpop.f32.mrf.mxu0  ;;  %2431 = vmatmul.mubr.msk.bf16.gmra.mxu1 %vm375_vm1, %v3279_v45  ;;  %2443 = vmatmul.mubr.msk.bf16.gmra.mxu0 %vm375_vm1, %v3279_v45 }
 0x161   : > { %v880_v44 = vsel %vm864_vm3, %v833_v33, %v835_v38  ;;  %v692_v51 = vadd.f32 %v635_v40, %v3327_v8  ;;  %1816 = vmatprep.mubr.bf16.mxu1 %v2884_v11  ;;  %1946 = vmatprep.mubr.bf16.mxu0 %v2884_v11  ;;  %v836_v62 = vrot.slane %v763_v43, 1 }
 0x162   : > { %v3425_v54 = vadd.f32 %v880_v44, %v691_v25  ;;  %v637_v55 = vpop.f32.mrf.mxu1  ;;  %v765_v58 = vpop.f32.mrf.mxu0 }
 0x163   : > { %v693_v59 = vadd.f32 %v637_v55, %v3337_v14  ;;  %v837_v2 = vrot.slane %v765_v58, 1 }
 0x164   : > { %v639_v60 = vpop.f32.mrf.mxu1  ;;  %v767_v61 = vpop.f32.mrf.mxu0 }
 0x165   : > { %v838_v0 = vrot.slane %v767_v61, 1 }
 0x166   : > { %v640_v45 = vpop.f32.mrf.mxu1  ;;  %v769_v1 = vpop.f32.mrf.mxu0 }
 0x167   : > { %v877_v8 = vsel %vm864_vm3, %v836_v62, %v838_v0  ;;  %v839_v3 = vrot.slane %v769_v1, 1 }
 0x168   : > { %v643_v4 = vpop.f32.mrf.mxu1  ;;  %v773_v5 = vpop.f32.mrf.mxu0  ;;  %2432 = vmatmul.mubr.msk.bf16.gmra.mxu1 %vm375_vm1, %v3286_v46  ;;  %2444 = vmatmul.mubr.msk.bf16.gmra.mxu0 %vm375_vm1, %v3286_v46  ;;  %v3434_v14 = vadd.f32 %v877_v8, %v692_v51 }
 0x169   : > { %v694_v10 = vadd.f32 %v643_v4, %v3351_v30  ;;  %1824 = vmatprep.mubr.bf16.mxu1 %v2884_v11  ;;  %1956 = vmatprep.mubr.bf16.mxu0 %v2884_v11  ;;  %v878_v12 = vsel %vm864_vm3, %v837_v2, %v839_v3  ;;  %v840_v46 = vrot.slane %v773_v5, 1 }
 0x16a   : > { %v645_v16 = vpop.f32.mrf.mxu1  ;;  %v775_v49 = vpop.f32.mrf.mxu0  ;;  %v3441_v17 = vadd.f32 %v878_v12, %v693_v59 }
 0x16b   : > { %v695_v50 = vadd.f32 %v645_v16, %v3361_v35  ;;  %v841_v30 = vrot.slane %v775_v49, 1 }
 0x16c   : > { %v647_v18 = vpop.f32.mrf.mxu1  ;;  %v777_v20 = vpop.f32.mrf.mxu0 }
 0x16d   : > { %v842_v21 = vrot.slane %v777_v20, 1 }
 0x16e   : > { %v648_v52 = vpop.f32.mrf.mxu1  ;;  %v779_v53 = vpop.f32.mrf.mxu0 }
 0x16f   : > { %v875_v23 = vsel %vm864_vm3, %v840_v46, %v842_v21  ;;  %v843_v24 = vrot.slane %v779_v53, 1 }
 0x170   : > { %v651_v25 = vpop.f32.mrf.mxu1  ;;  %v783_v26 = vpop.f32.mrf.mxu0  ;;  %2433 = vmatmul.mubr.msk.bf16.gmra.mxu1 %vm375_vm1, %v3293_v47  ;;  %2445 = vmatmul.mubr.msk.bf16.gmra.mxu0 %vm375_vm1, %v3293_v47  ;;  %v3450_v35 = vadd.f32 %v875_v23, %v694_v10 }
 0x171   : > { %v696_v27 = vadd.f32 %v651_v25, %v3375_v41  ;;  %1832 = vmatprep.mubr.bf16.mxu1 %v2884_v11  ;;  %1966 = vmatprep.mubr.bf16.mxu0 %v2884_v11  ;;  %v876_v42 = vsel %vm864_vm3, %v841_v30, %v843_v24  ;;  %v844_v47 = vrot.slane %v783_v26, 1 }
 0x172   : > { %v653_v28 = vpop.f32.mrf.mxu1  ;;  %v785_v29 = vpop.f32.mrf.mxu0  ;;  %v3457_v32 = vadd.f32 %v876_v42, %v695_v50 }
 0x173   : > { %v697_v33 = vadd.f32 %v653_v28, %v3385_v6  ;;  %v845_v41 = vrot.slane %v785_v29, 1 }
 0x174   : > { %v655_v37 = vpop.f32.mrf.mxu1  ;;  %v787_v38 = vpop.f32.mrf.mxu0 }
 0x175   : > { %v846_v40 = vrot.slane %v787_v38, 1 }
 0x176   : > { %v656_v43 = vpop.f32.mrf.mxu1  ;;  %v789_v44 = vpop.f32.mrf.mxu0 }
 0x177   : > { %v873_v51 = vsel %vm864_vm3, %v844_v47, %v846_v40  ;;  %v847_v55 = vrot.slane %v789_v44, 1 }
 0x178   : > { %v659_v58 = vpop.f32.mrf.mxu1  ;;  %v793_v59 = vpop.f32.mrf.mxu0  ;;  %2434 = vmatmul.mubr.msk.bf16.gmra.mxu1 %vm375_vm1, %v3300_v48  ;;  %2446 = vmatmul.mubr.msk.bf16.gmra.mxu0 %vm375_vm1, %v3300_v48  ;;  %v3466_v6 = vadd.f32 %v873_v51, %v696_v27 }
 0x179   : > { %v698_v60 = vadd.f32 %v659_v58, %v3397_v19  ;;  %1840 = vmatprep.mubr.bf16.mxu1 %v2884_v11  ;;  %1976 = vmatprep.mubr.bf16.mxu0 %v2884_v11  ;;  %v874_v61 = vsel %vm864_vm3, %v845_v41, %v847_v55  ;;  %v848_v48 = vrot.slane %v793_v59, 1 }
 0x17a   : > { %v661_v62 = vpop.f32.mrf.mxu1  ;;  %v795_v0 = vpop.f32.mrf.mxu0  ;;  %v3473_v45 = vadd.f32 %v874_v61, %v697_v33 }
 0x17b   : > { %v699_v1 = vadd.f32 %v661_v62, %v3409_v22  ;;  %v849_v19 = vrot.slane %v795_v0, 1 }
 0x17c   : > { %v663_v2 = vpop.f32.mrf.mxu1  ;;  %v797_v8 = vpop.f32.mrf.mxu0 }
 0x17d   : > { %v850_v3 = vrot.slane %v797_v8, 1 }
 0x17e   : > { %v664_v4 = vpop.f32.mrf.mxu1  ;;  %v799_v5 = vpop.f32.mrf.mxu0 }
 0x17f   : > { %v871_v10 = vsel %vm864_vm3, %v848_v48, %v850_v3  ;;  %v851_v12 = vrot.slane %v799_v5, 1 }
 0x180   : > { %v667_v16 = vpop.f32.mrf.mxu1  ;;  %v803_v49 = vpop.f32.mrf.mxu0  ;;  %2435 = vmatmul.mubr.msk.bf16.gmra.mxu1 %vm375_vm1, %v3315_v56  ;;  %2447 = vmatmul.mubr.msk.bf16.gmra.mxu0 %vm375_vm1, %v3315_v56  ;;  %v3482_v22 = vadd.f32 %v871_v10, %v698_v60 }
 0x181   : > { %v872_v50 = vsel %vm864_vm3, %v849_v19, %v851_v12  ;;  %v700_v18 = vadd.f32 %v667_v16, %v3331_v9  ;;  %1848 = vmatprep.mubr.bf16.mxu1 %v2884_v11  ;;  %1986 = vmatprep.mubr.bf16.mxu0 %v2884_v11  ;;  %v852_v56 = vrot.slane %v803_v49, 1 }
 0x182   : > { %v669_v20 = vpop.f32.mrf.mxu1  ;;  %v805_v46 = vpop.f32.mrf.mxu0  ;;  %v3489_v21 = vadd.f32 %v872_v50, %v699_v1 }
 0x183   : > { %v701_v52 = vadd.f32 %v669_v20, %v3341_v15  ;;  %v853_v26 = vrot.slane %v805_v46, 1 }
 0x184   : > { %v671_v53 = vpop.f32.mrf.mxu1  ;;  %v807_v30 = vpop.f32.mrf.mxu0 }
 0x185   : > { %v854_v23 = vrot.slane %v807_v30, 1 }
 0x186   : > { %v672_v24 = vpop.f32.mrf.mxu1  ;;  %v809_v25 = vpop.f32.mrf.mxu0 }
 0x187   : > { %v869_v9 = vsel %vm864_vm3, %v852_v56, %v854_v23  ;;  %v855_v27 = vrot.slane %v809_v25, 1 }
 0x188   : > { %v675_v42 = vpop.f32.mrf.mxu1  ;;  %v813_v28 = vpop.f32.mrf.mxu0  ;;  %2436 = vmatmul.mubr.msk.bf16.gmra.mxu1 %vm375_vm1, %v3333_v13  ;;  %2448 = vmatmul.mubr.msk.bf16.gmra.mxu0 %vm375_vm1, %v3333_v13  ;;  %v3498_v15 = vadd.f32 %v869_v9, %v700_v18 }
 0x189   : > { %v870_v29 = vsel %vm864_vm3, %v853_v26, %v855_v27  ;;  %v702_v33 = vadd.f32 %v675_v42, %v3355_v31  ;;  %1856 = vmatprep.mubr.bf16.mxu1 %v2884_v11  ;;  %1996 = vmatprep.mubr.bf16.mxu0 %v2884_v11  ;;  %v856_v13 = vrot.slane %v813_v28, 1 }
 0x18a   : > { %v677_v37 = vpop.f32.mrf.mxu1  ;;  %v815_v38 = vpop.f32.mrf.mxu0  ;;  %v3505_v47 = vadd.f32 %v870_v29, %v701_v52 }
 0x18b   : > { %v703_v40 = vadd.f32 %v677_v37, %v3365_v36  ;;  %v857_v58 = vrot.slane %v815_v38, 1 }
 0x18c   : > { %v679_v43 = vpop.f32.mrf.mxu1  ;;  %v817_v44 = vpop.f32.mrf.mxu0 }
 0x18d   : > { %v858_v41 = vrot.slane %v817_v44, 1 }
 0x18e   : > { %v680_v51 = vpop.f32.mrf.mxu1  ;;  %v819_v55 = vpop.f32.mrf.mxu0 }
 0x18f   : > { %v867_v31 = vsel %vm864_vm3, %v856_v13, %v858_v41  ;;  %v859_v59 = vrot.slane %v819_v55, 1 }
 0x190   : > { %v683_v60 = vpop.f32.mrf.mxu1  ;;  %v823_v61 = vpop.f32.mrf.mxu0  ;;  %2437 = vmatmul.mubr.msk.bf16.gmra.mxu1 %vm375_vm1, %v3357_v34  ;;  %2449 = vmatmul.mubr.msk.bf16.gmra.mxu0 %vm375_vm1, %v3357_v34  ;;  %v3514_v11 = vadd.f32 %v867_v31, %v702_v33 }
 0x191   : > { %v868_v36 = vsel %vm864_vm3, %v857_v58, %v859_v59  ;;  %v704_v62 = vadd.f32 %v683_v60, %v3379_v63  ;;  %v860_v4 = vrot.slane %v823_v61, 1 }
 0x192   : > { %v685_v0 = vpop.f32.mrf.mxu1  ;;  %v825_v1 = vpop.f32.mrf.mxu0  ;;  %v3519_v2 = vadd.f32 %v868_v36, %v703_v40 }
 0x193   : > { %v705_v8 = vadd.f32 %v685_v0, %v3389_v7  ;;  %v861_v34 = vrot.slane %v825_v1, 1 }
 0x194   : > { %v687_v48 = vpop.f32.mrf.mxu1  ;;  %v827_v3 = vpop.f32.mrf.mxu0 }
 0x195   : > { %v862_v5 = vrot.slane %v827_v3, 1 }
 0x196   : > { %v688_v19 = vpop.f32.mrf.mxu1  ;;  %v829_v10 = vpop.f32.mrf.mxu0 }
 0x197   : > { %v865_v12 = vsel %vm864_vm3, %v860_v4, %v862_v5  ;;  %v863_v16 = vrot.slane %v829_v10, 1 }
 0x198   : > { %v3524_v49 = vpop.f32.mrf.mxu1  ;;  %v3526_v63 = vpop.f32.mrf.mxu0  ;;  %v3528_v50 = vadd.f32 %v865_v12, %v704_v62 }
 0x199   : > { %v866_v7 = vsel %vm864_vm3, %v861_v34, %v863_v16 }
 0x19a   : > { %v3532_v18 = vpop.f32.mrf.mxu1  ;;  %v3534_v20 = vpop.f32.mrf.mxu0  ;;  %v3536_v46 = vadd.f32 %v866_v7, %v705_v8 }
 0x19c   : > { %v1029_v52 = vpop.f32.mrf.mxu1  ;;  %v1219_v53 = vpop.f32.mrf.mxu0 }
 0x19d   : > { %v1106_v25 = vrot.slane %v1029_v52, 7 }
 0x19e   : > { %v1031_v30 = vpop.f32.mrf.mxu1  ;;  %v1220_v56 = vpop.f32.mrf.mxu0 }
 0x19f   : > { %v1107_v42 = vrot.slane %v1031_v30, 7 }
 0x1a0   : > { %v1035_v23 = vpop.f32.mrf.mxu1  ;;  %v1223_v24 = vpop.f32.mrf.mxu0 }
 0x1a1   : > { %v1108_v26 = vrot.slane %v1035_v23, 7 }
 0x1a2   : > { %v1037_v9 = vpop.f32.mrf.mxu1  ;;  %v1225_v27 = vpop.f32.mrf.mxu0 }
 0x1a3   : > { %v1148_v28 = vsel %vm547_vm2, %v1106_v25, %v1108_v26  ;;  %v1109_v29 = vrot.slane %v1037_v9, 7 }
 0x1a4   : > { %v1154_v33 = vadd.f32 %v1148_v28, %v3434_v14  ;;  %v1039_v37 = vpop.f32.mrf.mxu1  ;;  %v1227_v38 = vpop.f32.mrf.mxu0 }
 0x1a5   : > { %v1149_v40 = vsel %vm547_vm2, %v1107_v42, %v1109_v29  ;;  %v1110_v31 = vrot.slane %v1039_v37, 7 }
 0x1a6   : > { %v3543_v43 = vadd.f32 %v1223_v24, %v1154_v33  ;;  %v1155_v44 = vadd.f32 %v1149_v40, %v3441_v17  ;;  %v1041_v13 = vpop.f32.mrf.mxu1  ;;  %v1228_v41 = vpop.f32.mrf.mxu0 }
 0x1a7   : > { %v1111_v14 = vrot.slane %v1041_v13, 7 }
 0x1a8   : > { %v3546_v51 = vadd.f32 %v1225_v27, %v1155_v44  ;;  %v1045_v55 = vpop.f32.mrf.mxu1  ;;  %v1231_v58 = vpop.f32.mrf.mxu0 }
 0x1a9   : > { %v1112_v59 = vrot.slane %v1045_v55, 7 }
 0x1aa   : > { %v1047_v60 = vpop.f32.mrf.mxu1  ;;  %v1233_v61 = vpop.f32.mrf.mxu0 }
 0x1ab   : > { %v1146_v36 = vsel %vm547_vm2, %v1110_v31, %v1112_v59  ;;  %v1113_v62 = vrot.slane %v1047_v60, 7 }
 0x1ac   : > { %v1156_v0 = vadd.f32 %v1146_v36, %v3450_v35  ;;  %v1049_v1 = vpop.f32.mrf.mxu1  ;;  %v1235_v8 = vpop.f32.mrf.mxu0 }
 0x1ad   : > { %v1147_v17 = vsel %vm547_vm2, %v1111_v14, %v1113_v62  ;;  %v1114_v12 = vrot.slane %v1049_v1, 7 }
 0x1ae   : > { %v3553_v48 = vadd.f32 %v1231_v58, %v1156_v0  ;;  %v1157_v3 = vadd.f32 %v1147_v17, %v3457_v32  ;;  %v1051_v4 = vpop.f32.mrf.mxu1  ;;  %v1236_v5 = vpop.f32.mrf.mxu0 }
 0x1af   : > { %v1115_v35 = vrot.slane %v1051_v4, 7 }
 0x1b0   : > { %v3556_v19 = vadd.f32 %v1233_v61, %v1157_v3  ;;  %v1055_v10 = vpop.f32.mrf.mxu1  ;;  %v1239_v34 = vpop.f32.mrf.mxu0 }
 0x1b1   : > { %v1116_v16 = vrot.slane %v1055_v10, 7 }
 0x1b2   : > { %v1057_v7 = vpop.f32.mrf.mxu1  ;;  %v1241_v52 = vpop.f32.mrf.mxu0 }
 0x1b3   : > { %v1144_v53 = vsel %vm547_vm2, %v1114_v12, %v1116_v16  ;;  %v1117_v30 = vrot.slane %v1057_v7, 7 }
 0x1b4   : > { %v1158_v56 = vadd.f32 %v1144_v53, %v3466_v6  ;;  %v1059_v23 = vpop.f32.mrf.mxu1  ;;  %v1243_v24 = vpop.f32.mrf.mxu0 }
 0x1b5   : > { %v1145_v32 = vsel %vm547_vm2, %v1115_v35, %v1117_v30  ;;  %v1118_v33 = vrot.slane %v1059_v23, 7 }
 0x1b6   : > { %v3563_v25 = vadd.f32 %v1239_v34, %v1158_v56  ;;  %v1159_v26 = vadd.f32 %v1145_v32, %v3473_v45  ;;  %v1061_v9 = vpop.f32.mrf.mxu1  ;;  %v1244_v27 = vpop.f32.mrf.mxu0 }
 0x1b7   : > { %v1119_v6 = vrot.slane %v1061_v9, 7 }
 0x1b8   : > { %v3566_v42 = vadd.f32 %v1241_v52, %v1159_v26  ;;  %v1065_v28 = vpop.f32.mrf.mxu1  ;;  %v1247_v29 = vpop.f32.mrf.mxu0 }
 0x1b9   : > { %v1120_v37 = vrot.slane %v1065_v28, 7 }
 0x1ba   : > { %v1067_v38 = vpop.f32.mrf.mxu1  ;;  %v1249_v40 = vpop.f32.mrf.mxu0 }
 0x1bb   : > { %v1142_v44 = vsel %vm547_vm2, %v1118_v33, %v1120_v37  ;;  %v1121_v13 = vrot.slane %v1067_v38, 7 }
 0x1bc   : > { %v1160_v41 = vadd.f32 %v1142_v44, %v3482_v22  ;;  %v1069_v55 = vpop.f32.mrf.mxu1  ;;  %v1251_v58 = vpop.f32.mrf.mxu0 }
 0x1bd   : > { %v1143_v45 = vsel %vm547_vm2, %v1119_v6, %v1121_v13  ;;  %v1122_v0 = vrot.slane %v1069_v55, 7 }
 0x1be   : > { %v3573_v31 = vadd.f32 %v1247_v29, %v1160_v41  ;;  %v1161_v59 = vadd.f32 %v1143_v45, %v3489_v21  ;;  %v1071_v60 = vpop.f32.mrf.mxu1  ;;  %v1252_v61 = vpop.f32.mrf.mxu0 }
 0x1bf   : > { %v1123_v22 = vrot.slane %v1071_v60, 7 }
 0x1c0   : > { %v3576_v14 = vadd.f32 %v1249_v40, %v1161_v59  ;;  %v1075_v36 = vpop.f32.mrf.mxu1  ;;  %v1255_v62 = vpop.f32.mrf.mxu0 }
 0x1c1   : > { %v1124_v1 = vrot.slane %v1075_v36, 7 }
 0x1c2   : > { %v1077_v8 = vpop.f32.mrf.mxu1  ;;  %v1257_v17 = vpop.f32.mrf.mxu0 }
 0x1c3   : > { %v1140_v3 = vsel %vm547_vm2, %v1122_v0, %v1124_v1  ;;  %v1125_v4 = vrot.slane %v1077_v8, 7 }
 0x1c4   : > { %v1162_v5 = vadd.f32 %v1140_v3, %v3498_v15  ;;  %v1079_v10 = vpop.f32.mrf.mxu1  ;;  %v1259_v34 = vpop.f32.mrf.mxu0 }
 0x1c5   : > { %v1141_v21 = vsel %vm547_vm2, %v1123_v22, %v1125_v4  ;;  %v1126_v56 = vrot.slane %v1079_v10, 7  ;;  %v1105_v4 = vrot.slane %v3532_v18, 7 }
 0x1c6   : > { %v3583_v12 = vadd.f32 %v1255_v62, %v1162_v5  ;;  %v1163_v16 = vadd.f32 %v1141_v21, %v3505_v47  ;;  %v1081_v7 = vpop.f32.mrf.mxu1  ;;  %v1260_v52 = vpop.f32.mrf.mxu0 }
 0x1c7   : > { %v1127_v15 = vrot.slane %v1081_v7, 7 }
 0x1c8   : > { %v3586_v35 = vadd.f32 %v1257_v17, %v1163_v16  ;;  %v1085_v53 = vpop.f32.mrf.mxu1  ;;  %v1263_v30 = vpop.f32.mrf.mxu0 }
 0x1c9   : > { %v1128_v23 = vrot.slane %v1085_v53, 7 }
 0x1ca   : > { %v1087_v24 = vpop.f32.mrf.mxu1  ;;  %v1265_v32 = vpop.f32.mrf.mxu0 }
 0x1cb   : > { %v1138_v26 = vsel %vm547_vm2, %v1126_v56, %v1128_v23  ;;  %v1129_v9 = vrot.slane %v1087_v24, 7 }
 0x1cc   : > { %v1164_v27 = vadd.f32 %v1138_v26, %v3514_v11  ;;  %v1089_v28 = vpop.f32.mrf.mxu1  ;;  %v1267_v29 = vpop.f32.mrf.mxu0 }
 0x1cd   : > { %v1139_v47 = vsel %vm547_vm2, %v1127_v15, %v1129_v9  ;;  %v1130_v41 = vrot.slane %v1089_v28, 7 }
 0x1ce   : > { %v3593_v33 = vadd.f32 %v1263_v30, %v1164_v27  ;;  %v1165_v37 = vadd.f32 %v1139_v47, %v3519_v2  ;;  %v1091_v38 = vpop.f32.mrf.mxu1  ;;  %v1268_v40 = vpop.f32.mrf.mxu0  ;;  %v1104_v2 = vrot.slane %v3524_v49, 7 }
 0x1cf   : > { %v1131_v11 = vrot.slane %v1091_v38, 7 }
 0x1d0   : > { %v3596_v6 = vadd.f32 %v1265_v32, %v1165_v37  ;;  %v1095_v44 = vpop.f32.mrf.mxu1  ;;  %v1271_v13 = vpop.f32.mrf.mxu0 }
 0x1d1   : > { %v1132_v55 = vrot.slane %v1095_v44, 7 }
 0x1d2   : > { %v1097_v58 = vpop.f32.mrf.mxu1  ;;  %v1273_v45 = vpop.f32.mrf.mxu0 }
 0x1d3   : > { %v1136_v59 = vsel %vm547_vm2, %v1130_v41, %v1132_v55  ;;  %v1133_v60 = vrot.slane %v1097_v58, 7 }
 0x1d4   : > { %v1166_v61 = vadd.f32 %v1136_v59, %v3528_v50  ;;  %v1099_v36 = vpop.f32.mrf.mxu1  ;;  %v1275_v62 = vpop.f32.mrf.mxu0 }
 0x1d5   : > { %v1137_v0 = vsel %vm547_vm2, %v1131_v11, %v1133_v60  ;;  %v1134_v1 = vrot.slane %v1099_v36, 7 }
 0x1d6   : > { %v3604_v8 = vadd.f32 %v1271_v13, %v1166_v61  ;;  %v1167_v17 = vadd.f32 %v1137_v0, %v3536_v46  ;;  %v1101_v22 = vpop.f32.mrf.mxu1  ;;  %v1276_v3 = vpop.f32.mrf.mxu0 }
 0x1d7   : > { %v1150_v5 = vsel %vm547_vm2, %v1134_v1, %v1104_v2  ;;  %v1135_v50 = vrot.slane %v1101_v22, 7 }
 0x1d8   : > { %v3610_v10 = vadd.f32 %v1273_v45, %v1167_v17  ;;  %v1152_v49 = vadd.f32 %v1150_v5, %v3414_v39  ;;  %v1341_v34 = vpop.f32.mrf.mxu1  ;;  %v3613_v21 = vpop.f32.mrf.mxu0 }
 0x1d9   : > { %v1151_v16 = vsel %vm547_vm2, %v1135_v50, %v1105_v4  ;;  %v1420_v53 = vrot.slane %v1341_v34, 1 }
 0x1da   : > { %v1153_v46 = vadd.f32 %v1151_v16, %v3425_v54  ;;  %v3618_v7 = vpop.f32.mrf.mxu1  ;;  %v3620_v52 = vpop.f32.mrf.mxu0  ;;  %v1278_v18 = vadd.f32 %v3526_v63, %v1152_v49 }
 0x1dc   : > { %v1345_v30 = vpop.f32.mrf.mxu1  ;;  %v1616_v56 = vpop.f32.mrf.mxu0  ;;  %v3624_v23 = vadd.f32 %v3534_v20, %v1153_v46 }
 0x1dd   : > { %v1422_v39 = vrot.slane %v1345_v30, 1  ;;  %v1693_v27 = vrot.slane %v1616_v56, 7 }
 0x1de   : > { %v3626_v24 = vpop.f32.mrf.mxu1  ;;  %v1618_v32 = vpop.f32.mrf.mxu0 }
 0x1df   : > { %v1466_v15 = vsel %vm864_vm3, %v1420_v53, %v1422_v39  ;;  %v1694_v47 = vrot.slane %v1618_v32, 7 }
 0x1e0   : > { %v1351_v54 = vpop.f32.mrf.mxu1  ;;  %v1622_v26 = vpop.f32.mrf.mxu0  ;;  %v3630_v9 = vadd.f32 %v1466_v15, %v1278_v18 }
 0x1e1   : > { %v1695_v28 = vrot.slane %v1622_v26, 7  ;;  %v1424_v37 = vrot.slane %v1351_v54, 1 }
 0x1e2   : > { %v1353_v63 = vpop.f32.mrf.mxu1  ;;  %v1624_v29 = vpop.f32.mrf.mxu0 }
 0x1e3   : > { %v1696_v38 = vrot.slane %v1624_v29, 7  ;;  %v1735_v20 = vsel %vm547_vm2, %v1693_v27, %v1695_v28  ;;  %v1425_v13 = vrot.slane %v1353_v63, 1 }
 0x1e4   : > { %v1355_v40 = vpop.f32.mrf.mxu1  ;;  %v1626_v44 = vpop.f32.mrf.mxu0 }
 0x1e5   : > { %v1426_v41 = vrot.slane %v1355_v40, 1  ;;  %v1736_v55 = vsel %vm547_vm2, %v1694_v47, %v1696_v38  ;;  %v1697_v62 = vrot.slane %v1626_v44, 7 }
 0x1e6   : > { %v1357_v58 = vpop.f32.mrf.mxu1  ;;  %v1628_v45 = vpop.f32.mrf.mxu0 }
 0x1e7   : > { %v1464_v11 = vsel %vm864_vm3, %v1424_v37, %v1426_v41  ;;  %v1427_v59 = vrot.slane %v1357_v58, 1  ;;  %v1698_v4 = vrot.slane %v1628_v45, 7 }
 0x1e8   : > { %v1361_v60 = vpop.f32.mrf.mxu1  ;;  %v1632_v61 = vpop.f32.mrf.mxu0  ;;  %v1470_v36 = vadd.f32 %v1464_v11, %v3543_v43 }
 0x1e9   : > { %v1465_v2 = vsel %vm864_vm3, %v1425_v13, %v1427_v59  ;;  %v1699_v0 = vrot.slane %v1632_v61, 7  ;;  %v1428_v5 = vrot.slane %v1361_v60, 1 }
 0x1ea   : > { %v1363_v1 = vpop.f32.mrf.mxu1  ;;  %v1634_v17 = vpop.f32.mrf.mxu0  ;;  %v3641_v22 = vadd.f32 %v1735_v20, %v1470_v36  ;;  %v1471_v3 = vadd.f32 %v1465_v2, %v3546_v51 }
 0x1eb   : > { %v1700_v50 = vrot.slane %v1634_v17, 7  ;;  %v1733_v49 = vsel %vm547_vm2, %v1697_v62, %v1699_v0  ;;  %v1429_v46 = vrot.slane %v1363_v1, 1 }
 0x1ec   : > { %v1365_v34 = vpop.f32.mrf.mxu1  ;;  %v1636_v16 = vpop.f32.mrf.mxu0  ;;  %v3646_v43 = vadd.f32 %v1736_v55, %v1471_v3 }
 0x1ed   : > { %v1430_v18 = vrot.slane %v1365_v34, 1  ;;  %v1734_v53 = vsel %vm547_vm2, %v1698_v4, %v1700_v50  ;;  %v1701_v26 = vrot.slane %v1636_v16, 7 }
 0x1ee   : > { %v1367_v30 = vpop.f32.mrf.mxu1  ;;  %v1638_v56 = vpop.f32.mrf.mxu0 }
 0x1ef   : > { %v1462_v51 = vsel %vm864_vm3, %v1428_v5, %v1430_v18  ;;  %v1431_v39 = vrot.slane %v1367_v30, 1  ;;  %v1702_v38 = vrot.slane %v1638_v56, 7 }
 0x1f0   : > { %v1371_v32 = vpop.f32.mrf.mxu1  ;;  %v1642_v15 = vpop.f32.mrf.mxu0  ;;  %v1472_v54 = vadd.f32 %v1462_v51, %v3553_v48 }
 0x1f1   : > { %v1463_v27 = vsel %vm864_vm3, %v1429_v46, %v1431_v39  ;;  %v1703_v28 = vrot.slane %v1642_v15, 7  ;;  %v1432_v20 = vrot.slane %v1371_v32, 1 }
 0x1f2   : > { %v1373_v63 = vpop.f32.mrf.mxu1  ;;  %v1644_v29 = vpop.f32.mrf.mxu0  ;;  %v3655_v47 = vadd.f32 %v1733_v49, %v1472_v54  ;;  %v1473_v37 = vadd.f32 %v1463_v27, %v3556_v19 }
 0x1f3   : > { %v1704_v40 = vrot.slane %v1644_v29, 7  ;;  %v1731_v44 = vsel %vm547_vm2, %v1701_v26, %v1703_v28  ;;  %v1433_v55 = vrot.slane %v1373_v63, 1 }
 0x1f4   : > { %v1375_v13 = vpop.f32.mrf.mxu1  ;;  %v1646_v41 = vpop.f32.mrf.mxu0  ;;  %v3660_v48 = vadd.f32 %v1734_v53, %v1473_v37 }
 0x1f5   : > { %v1434_v58 = vrot.slane %v1375_v13, 1  ;;  %v1732_v45 = vsel %vm547_vm2, %v1702_v38, %v1704_v40  ;;  %v1705_v2 = vrot.slane %v1646_v41, 7 }
 0x1f6   : > { %v1377_v11 = vpop.f32.mrf.mxu1  ;;  %v1648_v59 = vpop.f32.mrf.mxu0 }
 0x1f7   : > { %v1460_v19 = vsel %vm864_vm3, %v1432_v20, %v1434_v58  ;;  %v1435_v60 = vrot.slane %v1377_v11, 1  ;;  %v1706_v50 = vrot.slane %v1648_v59, 7 }
 0x1f8   : > { %v1381_v61 = vpop.f32.mrf.mxu1  ;;  %v1652_v36 = vpop.f32.mrf.mxu0  ;;  %v1474_v62 = vadd.f32 %v1460_v19, %v3563_v25 }
 0x1f9   : > { %v1461_v0 = vsel %vm864_vm3, %v1433_v55, %v1435_v60  ;;  %v1707_v1 = vrot.slane %v1652_v36, 7  ;;  %v1436_v49 = vrot.slane %v1381_v61, 1 }
 0x1fa   : > { %v1383_v17 = vpop.f32.mrf.mxu1  ;;  %v1654_v3 = vpop.f32.mrf.mxu0  ;;  %v3669_v4 = vadd.f32 %v1731_v44, %v1474_v62  ;;  %v1475_v5 = vadd.f32 %v1461_v0, %v3566_v42 }
 0x1fb   : > { %v1708_v34 = vrot.slane %v1654_v3, 7  ;;  %v1729_v16 = vsel %vm547_vm2, %v1705_v2, %v1707_v1  ;;  %v1437_v53 = vrot.slane %v1383_v17, 1 }
 0x1fc   : > { %v1385_v46 = vpop.f32.mrf.mxu1  ;;  %v1656_v18 = vpop.f32.mrf.mxu0  ;;  %v3674_v25 = vadd.f32 %v1732_v45, %v1475_v5 }
 0x1fd   : > { %v1438_v30 = vrot.slane %v1385_v46, 1  ;;  %v1730_v56 = vsel %vm547_vm2, %v1706_v50, %v1708_v34  ;;  %v1709_v27 = vrot.slane %v1656_v18, 7 }
 0x1fe   : > { %v1387_v51 = vpop.f32.mrf.mxu1  ;;  %v1658_v39 = vpop.f32.mrf.mxu0 }
 0x1ff   : > { %v1458_v42 = vsel %vm864_vm3, %v1436_v49, %v1438_v30  ;;  %v1439_v32 = vrot.slane %v1387_v51, 1  ;;  %v1710_v40 = vrot.slane %v1658_v39, 7 }
 0x200   : > { %v1391_v15 = vpop.f32.mrf.mxu1  ;;  %v1662_v54 = vpop.f32.mrf.mxu0  ;;  %v1476_v26 = vadd.f32 %v1458_v42, %v3573_v31 }
 0x201   : > { %v1459_v28 = vsel %vm864_vm3, %v1437_v53, %v1439_v32  ;;  %v1711_v63 = vrot.slane %v1662_v54, 7  ;;  %v1440_v44 = vrot.slane %v1391_v15, 1  ;;  %v1421_v54 = vrot.slane %v3618_v7, 1 }
 0x202   : > { %v1393_v29 = vpop.f32.mrf.mxu1  ;;  %v1664_v37 = vpop.f32.mrf.mxu0  ;;  %v3683_v38 = vadd.f32 %v1729_v16, %v1476_v26  ;;  %v1477_v20 = vadd.f32 %v1459_v28, %v3576_v14  ;;  %v1423_v26 = vrot.slane %v3626_v24, 1 }
 0x203   : > { %v1712_v13 = vrot.slane %v1664_v37, 7  ;;  %v1727_v41 = vsel %vm547_vm2, %v1709_v27, %v1711_v63  ;;  %v1441_v45 = vrot.slane %v1393_v29, 1 }
 0x204   : > { %v1395_v55 = vpop.f32.mrf.mxu1  ;;  %v1666_v58 = vpop.f32.mrf.mxu0  ;;  %v3688_v31 = vadd.f32 %v1730_v56, %v1477_v20 }
 0x205   : > { %v1442_v11 = vrot.slane %v1395_v55, 1  ;;  %v1728_v59 = vsel %vm547_vm2, %v1710_v40, %v1712_v13  ;;  %v1713_v0 = vrot.slane %v1666_v58, 7 }
 0x206   : > { %v1397_v19 = vpop.f32.mrf.mxu1  ;;  %v1668_v60 = vpop.f32.mrf.mxu0 }
 0x207   : > { %v1456_v14 = vsel %vm864_vm3, %v1440_v44, %v1442_v11  ;;  %v1443_v61 = vrot.slane %v1397_v19, 1  ;;  %v1714_v34 = vrot.slane %v1668_v60, 7 }
 0x208   : > { %v1401_v36 = vpop.f32.mrf.mxu1  ;;  %v1672_v62 = vpop.f32.mrf.mxu0  ;;  %v1478_v2 = vadd.f32 %v1456_v14, %v3583_v12 }
 0x209   : > { %v1457_v1 = vsel %vm864_vm3, %v1441_v45, %v1443_v61  ;;  %v1715_v17 = vrot.slane %v1672_v62, 7  ;;  %v1444_v16 = vrot.slane %v1401_v36, 1  ;;  %v1691_v45 = vrot.slane %v3613_v21, 7 }
 0x20a   : > { %v1403_v3 = vpop.f32.mrf.mxu1  ;;  %v1674_v5 = vpop.f32.mrf.mxu0  ;;  %v3697_v50 = vadd.f32 %v1727_v41, %v1478_v2  ;;  %v1479_v49 = vadd.f32 %v1457_v1, %v3586_v35  ;;  %v1692_v36 = vrot.slane %v3620_v52, 7 }
 0x20b   : > { %v1716_v46 = vrot.slane %v1674_v5, 7  ;;  %v1725_v18 = vsel %vm547_vm2, %v1713_v0, %v1715_v17  ;;  %v1445_v56 = vrot.slane %v1403_v3, 1 }
 0x20c   : > { %v1405_v53 = vpop.f32.mrf.mxu1  ;;  %v1676_v30 = vpop.f32.mrf.mxu0  ;;  %v3702_v12 = vadd.f32 %v1728_v59, %v1479_v49 }
 0x20d   : > { %v1446_v51 = vrot.slane %v1405_v53, 1  ;;  %v1726_v39 = vsel %vm547_vm2, %v1714_v34, %v1716_v46  ;;  %v1717_v29 = vrot.slane %v1676_v30, 7 }
 0x20e   : > { %v1407_v42 = vpop.f32.mrf.mxu1  ;;  %v1678_v32 = vpop.f32.mrf.mxu0 }
 0x20f   : > { %v1454_v35 = vsel %vm864_vm3, %v1444_v16, %v1446_v51  ;;  %v1447_v15 = vrot.slane %v1407_v42, 1  ;;  %v1718_v55 = vrot.slane %v1678_v32, 7  ;;  %v2079_v42 = vsub.s32 1, %v3317_v57 }
 0x210   : > { %v1411_v27 = vpop.f32.mrf.mxu1  ;;  %v1682_v28 = vpop.f32.mrf.mxu0  ;;  %v1480_v63 = vadd.f32 %v1454_v35, %v3593_v33  ;;  %v1467_v33 = vsel %vm864_vm3, %v1421_v54, %v1423_v26 }
 0x211   : > { %v1455_v37 = vsel %vm864_vm3, %v1445_v56, %v1447_v15  ;;  %v1719_v20 = vrot.slane %v1682_v28, 7  ;;  %v1448_v58 = vrot.slane %v1411_v27, 1  ;;  %v1469_v34 = vadd.f32 %v1467_v33, %v3624_v23  ;;  %v2071_v15 = vld [vmem:[%s261_s11] sm:$0x3]  ;;  %s2730_s11 = sshll.u32 %s2885_s28, 4  ;;  %s2731_s11 = int_to_ptr.vmem [resolvable:$false] %s2730_s11 }
 0x212   : > { %v1413_v40 = vpop.f32.mrf.mxu1  ;;  %v1684_v44 = vpop.f32.mrf.mxu0  ;;  %v3713_v13 = vadd.f32 %v1725_v18, %v1480_v63  ;;  %v1481_v41 = vadd.f32 %v1455_v37, %v3596_v6  ;;  %v2075_v23 = vsub.s32 0, %v3317_v57  ;;  %s2732_s1 = scalar_lea.vmem %s2731_s11, 2048  ;;  %p2733_p4 = scmp.lt.s32.totalorder %s3830_s29, %s2731_s11 }
 0x213   : > { %v1720_v7 = vrot.slane %v1684_v44, 7  ;;  %v1723_v24 = vsel %vm547_vm2, %v1717_v29, %v1719_v20  ;;  %v1449_v60 = vrot.slane %v1413_v40, 1  ;;  %v3753_v40 = vrot.slane %v2071_v15, %v2079_v42  ;;  %p2734_p5 = scmp.lt.s32.totalorder %s2732_s1, %s2726_s5 }
 0x214   : > { %v1415_v11 = vpop.f32.mrf.mxu1  ;;  %v1686_v59 = vpop.f32.mrf.mxu0  ;;  %v3721_v19 = vadd.f32 %v1726_v39, %v1481_v41  ;;  %v3751_v20 = vrot.slane %v2071_v15, %v2075_v23 }
 0x215   : > { %v1450_v14 = vrot.slane %v1415_v11, 1  ;;  %v1721_v61 = vrot.slane %v1686_v59, 7  ;;  %v1724_v6 = vsel %vm547_vm2, %v1718_v55, %v1720_v7  ;;  %p2735_p10 = por %p2734_p5, %p2733_p4 }
 0x216   : > { %v1417_v62 = vpop.f32.mrf.mxu1  ;;  %v1688_v2 = vpop.f32.mrf.mxu0 }
 0x217   : > { %v1452_v21 = vsel %vm864_vm3, %v1448_v58, %v1450_v14  ;;  %v1451_v0 = vrot.slane %v1417_v62, 1  ;;  %v1722_v1 = vrot.slane %v1688_v2, 7  ;;  %v1737_v17 = vsel %vm547_vm2, %v1721_v61, %v1691_v45  ;;  %p2736_p12 = pnand %p2735_p10, %p2729_p2 }
 0x218   : > { %v1739_v3 = vadd.f32 %v1737_v17, %v3630_v9  ;;  %v1802_v5 = vpop.f32.mrf.mxu1  ;;  %v1928_v49 = vpop.f32.mrf.mxu0  ;;  %v1482_v16 = vadd.f32 %v1452_v21, %v3604_v8 }
 0x219   : > { %v1453_v52 = vsel %vm864_vm3, %v1449_v60, %v1451_v0  ;;  %v1738_v46 = vsel %vm547_vm2, %v1722_v1, %v1692_v36  ;;  %v2007_v32 = vrot.slane %v1928_v49, 1 }
 0x21a   : > { %v1740_v18 = vadd.f32 %v1738_v46, %v1469_v34  ;;  %v1804_v53 = vpop.f32.mrf.mxu1  ;;  %v1930_v30 = vpop.f32.mrf.mxu0  ;;  %v3737_v56 = vadd.f32 %v1723_v24, %v1482_v16  ;;  %v1483_v9 = vadd.f32 %v1453_v52, %v3610_v10  ;;  %v1865_v54 = vadd.f32 %v1802_v5, %v1739_v3 }
 0x21b   : > { %v2008_v28 = vrot.slane %v1930_v30, 1 }
 0x21c   : > { %v1806_v51 = vpop.f32.mrf.mxu1  ;;  %v1932_v39 = vpop.f32.mrf.mxu0  ;;  %v3742_v8 = vadd.f32 %v1724_v6, %v1483_v9  ;;  %v1866_v29 = vadd.f32 %v1804_v53, %v1740_v18 }
 0x21d   : > { %v2009_v35 = vrot.slane %v1932_v39, 1 }
 0x21e   : > { %v1807_v26 = vpop.f32.mrf.mxu1  ;;  %v1934_v27 = vpop.f32.mrf.mxu0 }
 0x21f   : > { %v2053_v10 = vsel %vm864_vm3, %v2007_v32, %v2009_v35  ;;  %v2010_v63 = vrot.slane %v1934_v27, 1 }
 0x220   : > { %v2055_v37 = vadd.f32 %v2053_v10, %v1865_v54  ;;  %v1810_v44 = vpop.f32.mrf.mxu1  ;;  %v1938_v41 = vpop.f32.mrf.mxu0 }
 0x221   : > { %v2054_v55 = vsel %vm864_vm3, %v2008_v28, %v2010_v63  ;;  %v2011_v60 = vrot.slane %v1938_v41, 1  ;;  %v1867_v6 = vadd.f32 %v1810_v44, %v3641_v22 }
 0x222   : > { %v2056_v58 = vadd.f32 %v2054_v55, %v1866_v29  ;;  %v1812_v7 = vpop.f32.mrf.mxu1  ;;  %v1940_v24 = vpop.f32.mrf.mxu0  ;;  %v2083_v45 = vadd.f32 %v3751_v20, %v2055_v37 }
 0x223   : > { %v2012_v2 = vrot.slane %v1940_v24, 1  ;;  %v1868_v1 = vadd.f32 %v1812_v7, %v3646_v43 }
 0x224   : > { %v2084_v33 = vadd.f32 %v3753_v40, %v2056_v58  ;;  %v1814_v11 = vpop.f32.mrf.mxu1  ;;  %v1942_v59 = vpop.f32.mrf.mxu0 }
 0x225   : > { %v2013_v14 = vrot.slane %v1942_v59, 1 }
 0x226   : > { %v2466_v61 = vpack.c.bf16 %v2084_v33, %v2083_v45  ;;  %v1815_v36 = vpop.f32.mrf.mxu1  ;;  %v1944_v62 = vpop.f32.mrf.mxu0 }
 0x227   : > { %v2051_v21 = vsel %vm864_vm3, %v2011_v60, %v2013_v14  ;;  %v2014_v0 = vrot.slane %v1944_v62, 1 }
 0x228   : > { %2163 = vst [vmem:[%s3125_s15] sm:$0xff] %v2466_v61  ;;  %v2057_v17 = vadd.f32 %v2051_v21, %v1867_v6  ;;  %v1818_v3 = vpop.f32.mrf.mxu1  ;;  %v1948_v5 = vpop.f32.mrf.mxu0 }
 0x229   : > { %v2052_v49 = vsel %vm864_vm3, %v2012_v2, %v2014_v0  ;;  %v2015_v30 = vrot.slane %v1948_v5, 1  ;;  %v1869_v43 = vadd.f32 %v1818_v3, %v3655_v47 }
 0x22a   : > { %v2058_v34 = vadd.f32 %v2052_v49, %v1868_v1  ;;  %v1820_v16 = vpop.f32.mrf.mxu1  ;;  %v1950_v22 = vpop.f32.mrf.mxu0  ;;  %v2085_v52 = vadd.f32 %v3751_v20, %v2057_v17 }
 0x22b   : > { %v2016_v42 = vrot.slane %v1950_v22, 1  ;;  %v1870_v15 = vadd.f32 %v1820_v16, %v3660_v48 }
 0x22c   : > { %v2086_v46 = vadd.f32 %v3753_v40, %v2058_v34  ;;  %v1822_v18 = vpop.f32.mrf.mxu1  ;;  %v1952_v53 = vpop.f32.mrf.mxu0 }
 0x22d   : > { %v2017_v9 = vrot.slane %v1952_v53, 1 }
 0x22e   : > { %v2467_v51 = vpack.c.bf16 %v2086_v46, %v2085_v52  ;;  %v1823_v39 = vpop.f32.mrf.mxu1  ;;  %v1954_v23 = vpop.f32.mrf.mxu0 }
 0x22f   : > { %v2049_v32 = vsel %vm864_vm3, %v2015_v30, %v2017_v9  ;;  %v2018_v35 = vrot.slane %v1954_v23, 1 }
 0x230   : > { %2164 = vst [vmem:[%s3125_s15 + $0x8] sm:$0xff] %v2467_v51  ;;  %v2059_v54 = vadd.f32 %v2049_v32, %v1869_v43  ;;  %v1826_v26 = vpop.f32.mrf.mxu1  ;;  %v1958_v27 = vpop.f32.mrf.mxu0 }
 0x231   : > { %v2050_v28 = vsel %vm864_vm3, %v2016_v42, %v2018_v35  ;;  %v2019_v55 = vrot.slane %v1958_v27, 1  ;;  %v1871_v48 = vadd.f32 %v1826_v26, %v3669_v4 }
 0x232   : > { %v2060_v10 = vadd.f32 %v2050_v28, %v1870_v15  ;;  %v1828_v63 = vpop.f32.mrf.mxu1  ;;  %v1960_v47 = vpop.f32.mrf.mxu0  ;;  %v2087_v29 = vadd.f32 %v3751_v20, %v2059_v54 }
 0x233   : > { %v2020_v33 = vrot.slane %v1960_v47, 1  ;;  %v1872_v60 = vadd.f32 %v1828_v63, %v3674_v25 }
 0x234   : > { %v2088_v37 = vadd.f32 %v3753_v40, %v2060_v10  ;;  %v1830_v44 = vpop.f32.mrf.mxu1  ;;  %v1962_v41 = vpop.f32.mrf.mxu0 }
 0x235   : > { %v2021_v58 = vrot.slane %v1962_v41, 1 }
 0x236   : > { %v2468_v7 = vpack.c.bf16 %v2088_v37, %v2087_v29  ;;  %v1831_v24 = vpop.f32.mrf.mxu1  ;;  %v1964_v45 = vpop.f32.mrf.mxu0 }
 0x237   : > { %v2047_v11 = vsel %vm864_vm3, %v2019_v55, %v2021_v58  ;;  %v2022_v59 = vrot.slane %v1964_v45, 1 }
 0x238   : > { %2165 = vst [vmem:[%s3125_s15 + $0x10] sm:$0xff] %v2468_v7  ;;  %v2061_v14 = vadd.f32 %v2047_v11, %v1871_v48  ;;  %v1834_v61 = vpop.f32.mrf.mxu1  ;;  %v1968_v6 = vpop.f32.mrf.mxu0 }
 0x239   : > { %v2048_v36 = vsel %vm864_vm3, %v2020_v33, %v2022_v59  ;;  %v2023_v3 = vrot.slane %v1968_v6, 1  ;;  %v1873_v25 = vadd.f32 %v1834_v61, %v3683_v38 }
 0x23a   : > { %v2062_v62 = vadd.f32 %v2048_v36, %v1872_v60  ;;  %v1836_v2 = vpop.f32.mrf.mxu1  ;;  %v1970_v4 = vpop.f32.mrf.mxu0  ;;  %v2089_v21 = vadd.f32 %v3751_v20, %v2061_v14 }
 0x23b   : > { %v2024_v22 = vrot.slane %v1970_v4, 1  ;;  %v1874_v18 = vadd.f32 %v1836_v2, %v3688_v31 }
 0x23c   : > { %v2090_v0 = vadd.f32 %v3753_v40, %v2062_v62  ;;  %v1838_v1 = vpop.f32.mrf.mxu1  ;;  %v1972_v17 = vpop.f32.mrf.mxu0 }
 0x23d   : > { %v2025_v5 = vrot.slane %v1972_v17, 1 }
 0x23e   : > { %v2469_v49 = vpack.c.bf16 %v2090_v0, %v2089_v21  ;;  %v1839_v34 = vpop.f32.mrf.mxu1  ;;  %v1974_v16 = vpop.f32.mrf.mxu0 }
 0x23f   : > { %v2045_v52 = vsel %vm864_vm3, %v2023_v3, %v2025_v5  ;;  %v2026_v46 = vrot.slane %v1974_v16, 1 }
 0x240   : > { %2166 = vst [vmem:[%s3125_s15 + $0x18] sm:$0xff] %v2469_v49  ;;  %v2063_v53 = vadd.f32 %v2045_v52, %v1873_v25  ;;  %v1842_v30 = vpop.f32.mrf.mxu1  ;;  %v1978_v9 = vpop.f32.mrf.mxu0 }
 0x241   : > { %v2046_v51 = vsel %vm864_vm3, %v2024_v22, %v2026_v46  ;;  %v2027_v15 = vrot.slane %v1978_v9, 1  ;;  %v1875_v31 = vadd.f32 %v1842_v30, %v3697_v50 }
 0x242   : > { %v2064_v43 = vadd.f32 %v2046_v51, %v1874_v18  ;;  %v1844_v39 = vpop.f32.mrf.mxu1  ;;  %v1980_v38 = vpop.f32.mrf.mxu0  ;;  %v2091_v23 = vadd.f32 %v3751_v20, %v2063_v53 }
 0x243   : > { %v2028_v10 = vrot.slane %v1980_v38, 1  ;;  %v1876_v29 = vadd.f32 %v1844_v39, %v3702_v12 }
 0x244   : > { %v2092_v42 = vadd.f32 %v3753_v40, %v2064_v43  ;;  %v1846_v32 = vpop.f32.mrf.mxu1  ;;  %v1982_v35 = vpop.f32.mrf.mxu0 }
 0x245   : > { %v2029_v54 = vrot.slane %v1982_v35, 1 }
 0x246   : > { %v2470_v26 = vpack.c.bf16 %v2092_v42, %v2091_v23  ;;  %v1847_v27 = vpop.f32.mrf.mxu1  ;;  %v1984_v28 = vpop.f32.mrf.mxu0 }
 0x247   : > { %v2043_v63 = vsel %vm864_vm3, %v2027_v15, %v2029_v54  ;;  %v2030_v47 = vrot.slane %v1984_v28, 1 }
 0x248   : > { %2167 = vst [vmem:[%s3125_s15 + $0x20] sm:$0xff] %v2470_v26  ;;  %v2065_v37 = vadd.f32 %v2043_v63, %v1875_v31  ;;  %v1850_v44 = vpop.f32.mrf.mxu1  ;;  %v1988_v41 = vpop.f32.mrf.mxu0 }
 0x249   : > { %v2044_v55 = vsel %vm864_vm3, %v2028_v10, %v2030_v47  ;;  %v2031_v11 = vrot.slane %v1988_v41, 1  ;;  %v1877_v12 = vadd.f32 %v1850_v44, %v3713_v13 }
 0x24a   : > { %v2066_v58 = vadd.f32 %v2044_v55, %v1876_v29  ;;  %v1852_v7 = vpop.f32.mrf.mxu1  ;;  %v1990_v50 = vpop.f32.mrf.mxu0  ;;  %v2093_v48 = vadd.f32 %v3751_v20, %v2065_v37 }
 0x24b   : > { %v2032_v6 = vrot.slane %v1990_v50, 1  ;;  %v1878_v2 = vadd.f32 %v1852_v7, %v3721_v19 }
 0x24c   : > { %v2094_v24 = vadd.f32 %v3753_v40, %v2066_v58  ;;  %v1854_v45 = vpop.f32.mrf.mxu1  ;;  %v1992_v33 = vpop.f32.mrf.mxu0 }
 0x24d   : > { %v2033_v59 = vrot.slane %v1992_v33, 1 }
 0x24e   : > { %v2471_v60 = vpack.c.bf16 %v2094_v24, %v2093_v48  ;;  %v1855_v14 = vpop.f32.mrf.mxu1  ;;  %v1994_v61 = vpop.f32.mrf.mxu0 }
 0x24f   : > { %v2041_v36 = vsel %vm864_vm3, %v2031_v11, %v2033_v59  ;;  %v2034_v62 = vrot.slane %v1994_v61, 1 }
 0x250   : > { %2168 = vst [vmem:[%s3125_s15 + $0x28] sm:$0xff] %v2471_v60  ;;  %v2067_v4 = vadd.f32 %v2041_v36, %v1877_v12  ;;  %v1858_v21 = vpop.f32.mrf.mxu1  ;;  %v1998_v0 = vpop.f32.mrf.mxu0 }
 0x251   : > { %v2042_v1 = vsel %vm864_vm3, %v2032_v6, %v2034_v62  ;;  %v2035_v16 = vrot.slane %v1998_v0, 1  ;;  %v1879_v52 = vadd.f32 %v1858_v21, %v3737_v56 }
 0x252   : > { %v2068_v17 = vadd.f32 %v2042_v1, %v1878_v2  ;;  %v1860_v3 = vpop.f32.mrf.mxu1  ;;  %v2000_v13 = vpop.f32.mrf.mxu0  ;;  %v2095_v5 = vadd.f32 %v3751_v20, %v2067_v4 }
 0x253   : > { %v2036_v53 = vrot.slane %v2000_v13, 1  ;;  %v1880_v51 = vadd.f32 %v1860_v3, %v3742_v8 }
 0x254   : > { %v2096_v49 = vadd.f32 %v3753_v40, %v2068_v17  ;;  %v1862_v25 = vpop.f32.mrf.mxu1  ;;  %v2002_v34 = vpop.f32.mrf.mxu0 }
 0x255   : > { %v2037_v19 = vrot.slane %v2002_v34, 1 }
 0x256   : > { %v2472_v22 = vpack.c.bf16 %v2096_v49, %v2095_v5  ;;  %v1863_v46 = vpop.f32.mrf.mxu1  ;;  %v2004_v18 = vpop.f32.mrf.mxu0 }
 0x257   : > { %v2039_v30 = vsel %vm864_vm3, %v2035_v16, %v2037_v19  ;;  %v2038_v9 = vrot.slane %v2004_v18, 1 }
 0x258   : > { %2169 = vst [vmem:[%s3125_s15 + $0x30] sm:$0xff] %v2472_v22  ;;  %v2069_v43 = vadd.f32 %v2039_v30, %v1879_v52 }
 0x259   : > { %v2040_v39 = vsel %vm864_vm3, %v2036_v53, %v2038_v9 }
 0x25a   : > { %v2070_v56 = vadd.f32 %v2040_v39, %v1880_v51  ;;  %v2097_v38 = vadd.f32 %v3751_v20, %v2069_v43 }
 0x25c   : > { %v2098_v23 = vadd.f32 %v3753_v40, %v2070_v56 }
 0x25e   : > { %v2473_v8 = vpack.c.bf16 %v2098_v23, %v2097_v38 }
 0x260   : > { %2170 = vst [vmem:[%s3125_s15 + $0x38] sm:$0xff] %v2473_v8 }
 0x261   : > { %2739 = shalt.err (!%p2736_p12)
}
 0x262   : > { %s2740_s22 = scalar_lea.hbm %s3828_s4, 1024  ;;  %s2744_s18 = scalar_lea.hbm %s3945_s27, 4096 }
 0x263   : > { %p2741_p3 = scmp.ne.s32.totalorder %s3828_s4, %s2740_s22  ;;  %p2745_p7 = scmp.lt.s32.totalorder %s3828_s4, %s3945_s27 }
 0x264   : > { %p2746_p6 = scmp.lt.s32.totalorder %s2744_s18, %s2740_s22 }
 0x265   : > { %p2742_p13 = pnand %p2741_p3, %p3060_p1 }
 0x266   : > { %p2747_p11 = por %p2746_p6, %p2745_p7 }
 0x267   : > { %p2743_p0 = pneg %p2742_p13 }
 0x269   : > { %p2748_p8 = pnand %p2747_p11, %p2743_p0 }
 0x26b   : > { %2751 = shalt.err (!%p2748_p8)
}
 0x26c   : > { %s2886_s9 = smov 128   ;;  %s2887_s6 = smov 256  }
 0x26d   : > { %s2888_s26 = smov 8  }
 0x26e   : > { %2482 = dma.vmem_to_hbm [thread:$0]  (%p3060_p1), %s3830_s29, 1024, %s3828_s4, %s3835_s24, %s2886_s9, %s2887_s6, %s2888_s26  }
 0x26f PF: > { %p2496_p9 = scmp.ge.s32.totalorder %s2874_s25, 2  ;;  %s2202_s5 = sand.u32 1, %s2822_s12  }
 0x270   : > { %p3946_p2 = scmp.ne.s32.totalorder %s3940_s30, 0  ;;  %s2203_s28 = scalar_lea.sflag [#allocation5], %s2202_s5 }
 0x272   : > { %p2492_p4 = pnand %p2496_p9, %p3946_p2 }
 0x274   : > { %p2493_p5 = pneg %p2492_p4 }
 0x276   : > { %2817 = dma.done.wait (%p2493_p5), %s2203_s28, 1024  }
 0x277   : > { %2819 = vsyncadd (%p2493_p5), %s2203_s28, 4294966272  ;;  %s22_s25 = sadd.s32 1, %s2874_s25   ;;  %s3948_s7 = sld [smem:[#allocation16_spill]] }
 0x278   : > { %p3863_p10 = scmp.ge.s32.totalorder %s22_s25, 6   ;;  %s3949_s22 = sld [smem:[#allocation13_spill]] }
 0x279   : > { %s3950_s30 = sld [smem:[#allocation14_spill]]  ;;  %s3952_s12 = smov %s2826_s13 }
 0x27a   : > { %s3951_s24 = sld [smem:[#allocation15_spill]]  ;;  %s3953_s13 = smov %s2830_s14 }
 0x27b   : > { %s3954_s14 = smov %s3072_s0  ;;  %s3955_s15 = smov %s2838_s16 }
 0x27c   : > { %s3956_s16 = smov %s2842_s17  ;;  %s3958_s18 = smov %s2850_s19 }
 0x27d   : > { %s3957_s17 = smov %s3948_s7  ;;  %s3959_s19 = smov %s2854_s20 }
 0x27e   : > { %s3960_s20 = smov %s3069_s3  ;;  %s3961_s21 = smov %s2866_s23 }
 0x27f   : > { %s3962_s23 = smov %s3950_s30  ;;  %21 = sbr.rel (!%p3863_p10) target bundleno = 16 (0x10), region = 108 }
 0x284   :  { %2208 = vsyncpa [#allocation4], 1 }
 0x285   :  { %2210 = vsyncpa [#allocation4 + $0x1], 1 }
 0x286   :  { %2211 = vsyncpa [#allocation7], 1 }
 0x287   :  { %2213 = vsyncpa [#allocation7 + $0x1], 1 }
 0x288   :  { %2214 = vsyncpa [#allocation5], 1 }
 0x289   :  { %2216 = vsyncpa [#allocation5 + $0x1], 1 }

</bundles_post_ra>
